<compile_context>
chip_gen: v7x
topology: tpu7x:2x2x1
jax: 0.10.0
libtpu: 0.0.40
codegen_flags: <defaults>
</compile_context>

<pallas_src>
import jax
import jax.numpy as jnp
from jax import lax
from jax.experimental import pallas as pl
from jax.experimental.pallas import tpu as pltpu


# ---------------------------------------------------------------------------
# Single fused kernel: embedding(+view scramble) + conv + ReLU + pool + head
# ---------------------------------------------------------------------------
def _fused_cnn_kernel(ids_scr_ref, tsel_ref, wcat_ref, bconv_ref, wyct_ref,
                      byc_ref, out_ref):
    # ids_scr_ref: (B, D, L) int32  ids[b, (d*L+l)//D]   (view scramble, index domain)
    # tsel_ref:    (V, D, L) f32    table[v, (d*L+l)%D]  (channel-scrambled table)
    # wcat_ref:    (H, 3D)  f32     wcat[h, k*D+d] = w_conv[h, d, k]  (im2col weight)
    # bconv_ref:   (H, 1)   f32
    # wyct_ref:    (H, O)   f32     w_yc.T
    # byc_ref:     (1, O)   f32
    # out_ref:     (B, O)   f32     softmax probabilities
    B, D, L = ids_scr_ref.shape
    V = tsel_ref.shape[0]

    zcol = jnp.zeros((D, 1), jnp.float32)
    xcat_blocks = []
    for b in range(B):                          # B is tiny & static -> unrolled
        # ---- embedding fused with torch's raw `.view(-1, D, L)` scramble ----
        # x_b[d, l] = table[ids[b, (d*L+l)//D], (d*L+l)%D]
        ids_b = ids_scr_ref[b]                  # (D, L) int32
        x_b = jnp.zeros((D, L), jnp.float32)
        # TODO(synk): this V-step select-accumulate (like the one-hot matmul it
        # replaces) only makes sense for small vocabularies; for a realistic V
        # switch to a scalar-prefetch / DMA row-gather of the embedding table.
        for v in range(V):
            x_b = x_b + jnp.where(ids_b == v, tsel_ref[v], 0.0)

        # ---- im2col: stack taps [l-1, l, l+1] on sublanes -> (3D, L) ----
        x_m1 = jnp.concatenate([zcol, x_b[:, :L - 1]], axis=1)   # pos l-1 (zero at l=0)
        x_p1 = jnp.concatenate([x_b[:, 1:], zcol], axis=1)       # pos l+1 (zero at l=L-1)
        xcat_blocks.append(jnp.concatenate([x_m1, x_b, x_p1], axis=0))
    xcat = jnp.concatenate(xcat_blocks, axis=1)                  # (3D, B*L), seq on lanes

    # ---- Conv1d(k=3, pad=1) as ONE matmul + bias + ReLU, lane-dense (H, B*L) ----
    conv = (jnp.dot(wcat_ref[...], xcat, preferred_element_type=jnp.float32)
            + bconv_ref[...])                                    # (H, B*L)
    p = jnp.maximum(conv, 0.0)

    # ---- MaxPool1d(L): per-batch max over the lane (seq) axis -> (H, B) ----
    pooled = jnp.concatenate(
        [jnp.max(p[:, b * L:(b + 1) * L], axis=1, keepdims=True)
         for b in range(B)], axis=1)                             # (H, B)

    # ---- Linear(H -> O): broadcast-multiply + sublane reduce (no transpose) ----
    rows = [jnp.sum(pooled[:, b:b + 1] * wyct_ref[...], axis=0, keepdims=True)
            for b in range(B)]                                   # each (1, O)
    logits = jnp.concatenate(rows, axis=0) + byc_ref[...]        # (B, O)

    # ---- softmax(dim=1) ----
    m = jnp.max(logits, axis=1, keepdims=True)
    e = jnp.exp(logits - m)
    out_ref[...] = e / jnp.sum(e, axis=1, keepdims=True)


@jax.jit
def cnn_forward(ids, emb_table, w_conv, b_conv, w_yc, b_yc):
    B, L = ids.shape
    V, D = emb_table.shape
    H = w_conv.shape[0]
    O = w_yc.shape[0]

    # Static index maps of torch's raw `.view(-1, D, L)` (row-major reshape):
    # flat position i = d*L + l reads embedding element (i // D, i % D).
    flat = jnp.arange(D * L, dtype=jnp.int32).reshape(D, L)
    seq_idx = flat // D                                          # (D, L), static
    chan_idx = flat % D                                          # (D, L), static

    # Tiny integer scramble of the ids (only id-dependent glue left outside).
    ids_scr = jnp.take(ids.astype(jnp.int32), seq_idx, axis=1)   # (B, D, L)

    # One-time weight re-layouts (would be folded into the checkpoint / done
    # once per weight update in practice).
    tsel = jnp.take(emb_table, chan_idx, axis=1)                 # (V, D, L) = table[v, chan]
    w_cat = jnp.transpose(w_conv, (0, 2, 1)).reshape(H, 3 * D)   # (H, 3D) im2col weight
    b_conv_col = b_conv.reshape(H, 1)
    w_yc_t = w_yc.T                                              # (H, O)
    b_yc_row = b_yc.reshape(1, O)

    return pl.pallas_call(
        _fused_cnn_kernel,
        out_shape=jax.ShapeDtypeStruct((B, O), jnp.float32),
        grid_spec=pltpu.PrefetchScalarGridSpec(
            num_scalar_prefetch=0,
            # Whole (tiny) batch in a single grid step; for large B this leading
            # axis would be tiled over batch blocks and stays "parallel" so v7x
            # can shard it across its two TensorCores.
            grid=(1,),
            in_specs=[
                pl.BlockSpec((B, D, L), lambda i: (0, 0, 0)),
                pl.BlockSpec((V, D, L), lambda i: (0, 0, 0)),
                pl.BlockSpec((H, 3 * D), lambda i: (0, 0)),
                pl.BlockSpec((H, 1), lambda i: (0, 0)),
                pl.BlockSpec((H, O), lambda i: (0, 0)),
                pl.BlockSpec((1, O), lambda i: (0, 0)),
            ],
            out_specs=pl.BlockSpec((B, O), lambda i: (0, 0)),
        ),
        compiler_params=pltpu.CompilerParams(
            dimension_semantics=("parallel",)),
    )(ids_scr, tsel, w_cat, b_conv_col, w_yc_t, b_yc_row)


# ---------------------------------------------------------------------------
# Pure-JAX reference (mirrors the torch forward exactly)
# ---------------------------------------------------------------------------
def cnn_ref(ids, emb_table, w_conv, b_conv, w_yc, b_yc):
    B, L = ids.shape
    D = emb_table.shape[1]
    e = emb_table[ids]                                   # (B, L, D) embedding
    x = e.reshape(B, D, L)                               # torch .view(-1, D, L)
    xpad = jnp.pad(x, ((0, 0), (0, 0), (1, 1)))          # Conv1d padding=1
    conv = b_conv[None, :, None]
    for k in range(3):
        conv = conv + jnp.einsum('hd,bdl->bhl', w_conv[:, :, k],
                                 xpad[:, :, k:k + L],
                                 precision=lax.Precision.HIGHEST)
    p = jnp.maximum(conv, 0.0)                           # ReLU
    c = jnp.max(p, axis=2)                               # MaxPool1d(L) -> (B, H)
    logits = jnp.dot(c, w_yc.T, precision=lax.Precision.HIGHEST) + b_yc
    return jax.nn.softmax(logits, axis=1)


if __name__ == "__main__":
    # small shapes consistent with the module (MaxPool1d(120) => L = 120)
    B, L = 2, 120
    V, D, H, O = 32, 16, 32, 4   # vocab_size, data_size, hidden_size, output_size

    key = jax.random.PRNGKey(0)
    k_ids, k_emb, k_wc, k_bc, k_wy, k_by = jax.random.split(key, 6)
    ids = jax.random.randint(k_ids, (B, L), 0, V, dtype=jnp.int32)
    emb_table = jax.random.normal(k_emb, (V, D), jnp.float32) * 0.5
    w_conv = jax.random.normal(k_wc, (H, D, 3), jnp.float32) * 0.2
    b_conv = jax.random.normal(k_bc, (H,), jnp.float32) * 0.1
    w_yc = jax.random.normal(k_wy, (O, H), jnp.float32) * 0.2
    b_yc = jax.random.normal(k_by, (O,), jnp.float32) * 0.1

    y = cnn_forward(ids, emb_table, w_conv, b_conv, w_yc, b_yc)
    y = jax.block_until_ready(y)

    y_ref = cnn_ref(ids, emb_table, w_conv, b_conv, w_yc, b_yc)
    assert y.shape == (B, O)
    assert jnp.allclose(jnp.sum(y, axis=1), 1.0, atol=1e-5)
    assert jnp.allclose(y, y_ref, atol=2e-3, rtol=2e-3)
    print("KERNEL_OK")
</pallas_src>

<mosaic_0001>
module attributes {stable_mosaic.version = 11 : i64} {
  func.func @_fused_cnn_kernel(%arg0: i32, %arg1: memref<2x16x120xi32, #tpu.memory_space<vmem>>, %arg2: memref<32x16x120xf32, #tpu.memory_space<vmem>>, %arg3: memref<32x48xf32, #tpu.memory_space<vmem>>, %arg4: memref<32x1xf32, #tpu.memory_space<vmem>>, %arg5: memref<32x4xf32, #tpu.memory_space<vmem>>, %arg6: memref<1x4xf32, #tpu.memory_space<vmem>>, %arg7: memref<2x4xf32, #tpu.memory_space<vmem>>) attributes {dimension_semantics = [#tpu.dimension_semantics<parallel>], iteration_bounds = array<i64: 1>, scalar_prefetch = 0 : i64, scratch_operands = 0 : i64, tpu.core_type = #tpu.core_type<tc>, window_params = [{pipeline_mode = #tpu.pipeline_mode<synchronous>, transform_indices = @transform_0, window_bounds = array<i64: 2, 16, 120>}, {pipeline_mode = #tpu.pipeline_mode<synchronous>, transform_indices = @transform_1, window_bounds = array<i64: 32, 16, 120>}, {pipeline_mode = #tpu.pipeline_mode<synchronous>, transform_indices = @transform_2, window_bounds = array<i64: 32, 48>}, {pipeline_mode = #tpu.pipeline_mode<synchronous>, transform_indices = @transform_3, window_bounds = array<i64: 32, 1>}, {pipeline_mode = #tpu.pipeline_mode<synchronous>, transform_indices = @transform_4, window_bounds = array<i64: 32, 4>}, {pipeline_mode = #tpu.pipeline_mode<synchronous>, transform_indices = @transform_5, window_bounds = array<i64: 1, 4>}, {pipeline_mode = #tpu.pipeline_mode<synchronous>, transform_indices = @transform_6, window_bounds = array<i64: 2, 4>}]} {
    %cst = arith.constant 0.000000e+00 : f32
    %0 = vector.broadcast %cst : f32 to vector<16x1xf32>
    %c0 = arith.constant 0 : index
    %c0_0 = arith.constant 0 : index
    %c0_1 = arith.constant 0 : index
    %1 = vector.load %arg1[%c0, %c0_0, %c0_1] : memref<2x16x120xi32, #tpu.memory_space<vmem>>, vector<1x16x120xi32>
    %2 = vector.shape_cast %1 : vector<1x16x120xi32> to vector<16x120xi32>
    %cst_2 = arith.constant 0.000000e+00 : f32
    %3 = vector.broadcast %cst_2 : f32 to vector<16x120xf32>
    %c0_i32 = arith.constant 0 : i32
    %4 = vector.broadcast %c0_i32 : i32 to vector<16x120xi32>
    %5 = arith.cmpi eq, %2, %4 : vector<16x120xi32>
    %c0_3 = arith.constant 0 : index
    %c0_4 = arith.constant 0 : index
    %c0_5 = arith.constant 0 : index
    %6 = vector.load %arg2[%c0_3, %c0_4, %c0_5] : memref<32x16x120xf32, #tpu.memory_space<vmem>>, vector<1x16x120xf32>
    %7 = vector.shape_cast %6 : vector<1x16x120xf32> to vector<16x120xf32>
    %cst_6 = arith.constant 0.000000e+00 : f32
    %8 = vector.broadcast %cst_6 : f32 to vector<16x120xf32>
    %9 = arith.select %5, %7, %8 : vector<16x120xi1>, vector<16x120xf32>
    %10 = arith.addf %3, %9 : vector<16x120xf32>
    %c1_i32 = arith.constant 1 : i32
    %11 = vector.broadcast %c1_i32 : i32 to vector<16x120xi32>
    %12 = arith.cmpi eq, %2, %11 : vector<16x120xi32>
    %c1 = arith.constant 1 : index
    %c0_7 = arith.constant 0 : index
    %c0_8 = arith.constant 0 : index
    %13 = vector.load %arg2[%c1, %c0_7, %c0_8] : memref<32x16x120xf32, #tpu.memory_space<vmem>>, vector<1x16x120xf32>
    %14 = vector.shape_cast %13 : vector<1x16x120xf32> to vector<16x120xf32>
    %cst_9 = arith.constant 0.000000e+00 : f32
    %15 = vector.broadcast %cst_9 : f32 to vector<16x120xf32>
    %16 = arith.select %12, %14, %15 : vector<16x120xi1>, vector<16x120xf32>
    %17 = arith.addf %10, %16 : vector<16x120xf32>
    %c2_i32 = arith.constant 2 : i32
    %18 = vector.broadcast %c2_i32 : i32 to vector<16x120xi32>
    %19 = arith.cmpi eq, %2, %18 : vector<16x120xi32>
    %c2 = arith.constant 2 : index
    %c0_10 = arith.constant 0 : index
    %c0_11 = arith.constant 0 : index
    %20 = vector.load %arg2[%c2, %c0_10, %c0_11] : memref<32x16x120xf32, #tpu.memory_space<vmem>>, vector<1x16x120xf32>
    %21 = vector.shape_cast %20 : vector<1x16x120xf32> to vector<16x120xf32>
    %cst_12 = arith.constant 0.000000e+00 : f32
    %22 = vector.broadcast %cst_12 : f32 to vector<16x120xf32>
    %23 = arith.select %19, %21, %22 : vector<16x120xi1>, vector<16x120xf32>
    %24 = arith.addf %17, %23 : vector<16x120xf32>
    %c3_i32 = arith.constant 3 : i32
    %25 = vector.broadcast %c3_i32 : i32 to vector<16x120xi32>
    %26 = arith.cmpi eq, %2, %25 : vector<16x120xi32>
    %c3 = arith.constant 3 : index
    %c0_13 = arith.constant 0 : index
    %c0_14 = arith.constant 0 : index
    %27 = vector.load %arg2[%c3, %c0_13, %c0_14] : memref<32x16x120xf32, #tpu.memory_space<vmem>>, vector<1x16x120xf32>
    %28 = vector.shape_cast %27 : vector<1x16x120xf32> to vector<16x120xf32>
    %cst_15 = arith.constant 0.000000e+00 : f32
    %29 = vector.broadcast %cst_15 : f32 to vector<16x120xf32>
    %30 = arith.select %26, %28, %29 : vector<16x120xi1>, vector<16x120xf32>
    %31 = arith.addf %24, %30 : vector<16x120xf32>
    %c4_i32 = arith.constant 4 : i32
    %32 = vector.broadcast %c4_i32 : i32 to vector<16x120xi32>
    %33 = arith.cmpi eq, %2, %32 : vector<16x120xi32>
    %c4 = arith.constant 4 : index
    %c0_16 = arith.constant 0 : index
    %c0_17 = arith.constant 0 : index
    %34 = vector.load %arg2[%c4, %c0_16, %c0_17] : memref<32x16x120xf32, #tpu.memory_space<vmem>>, vector<1x16x120xf32>
    %35 = vector.shape_cast %34 : vector<1x16x120xf32> to vector<16x120xf32>
    %cst_18 = arith.constant 0.000000e+00 : f32
    %36 = vector.broadcast %cst_18 : f32 to vector<16x120xf32>
    %37 = arith.select %33, %35, %36 : vector<16x120xi1>, vector<16x120xf32>
    %38 = arith.addf %31, %37 : vector<16x120xf32>
    %c5_i32 = arith.constant 5 : i32
    %39 = vector.broadcast %c5_i32 : i32 to vector<16x120xi32>
    %40 = arith.cmpi eq, %2, %39 : vector<16x120xi32>
    %c5 = arith.constant 5 : index
    %c0_19 = arith.constant 0 : index
    %c0_20 = arith.constant 0 : index
    %41 = vector.load %arg2[%c5, %c0_19, %c0_20] : memref<32x16x120xf32, #tpu.memory_space<vmem>>, vector<1x16x120xf32>
    %42 = vector.shape_cast %41 : vector<1x16x120xf32> to vector<16x120xf32>
    %cst_21 = arith.constant 0.000000e+00 : f32
    %43 = vector.broadcast %cst_21 : f32 to vector<16x120xf32>
    %44 = arith.select %40, %42, %43 : vector<16x120xi1>, vector<16x120xf32>
    %45 = arith.addf %38, %44 : vector<16x120xf32>
    %c6_i32 = arith.constant 6 : i32
    %46 = vector.broadcast %c6_i32 : i32 to vector<16x120xi32>
    %47 = arith.cmpi eq, %2, %46 : vector<16x120xi32>
    %c6 = arith.constant 6 : index
    %c0_22 = arith.constant 0 : index
    %c0_23 = arith.constant 0 : index
    %48 = vector.load %arg2[%c6, %c0_22, %c0_23] : memref<32x16x120xf32, #tpu.memory_space<vmem>>, vector<1x16x120xf32>
    %49 = vector.shape_cast %48 : vector<1x16x120xf32> to vector<16x120xf32>
    %cst_24 = arith.constant 0.000000e+00 : f32
    %50 = vector.broadcast %cst_24 : f32 to vector<16x120xf32>
    %51 = arith.select %47, %49, %50 : vector<16x120xi1>, vector<16x120xf32>
    %52 = arith.addf %45, %51 : vector<16x120xf32>
    %c7_i32 = arith.constant 7 : i32
    %53 = vector.broadcast %c7_i32 : i32 to vector<16x120xi32>
    %54 = arith.cmpi eq, %2, %53 : vector<16x120xi32>
    %c7 = arith.constant 7 : index
    %c0_25 = arith.constant 0 : index
    %c0_26 = arith.constant 0 : index
    %55 = vector.load %arg2[%c7, %c0_25, %c0_26] : memref<32x16x120xf32, #tpu.memory_space<vmem>>, vector<1x16x120xf32>
    %56 = vector.shape_cast %55 : vector<1x16x120xf32> to vector<16x120xf32>
    %cst_27 = arith.constant 0.000000e+00 : f32
    %57 = vector.broadcast %cst_27 : f32 to vector<16x120xf32>
    %58 = arith.select %54, %56, %57 : vector<16x120xi1>, vector<16x120xf32>
    %59 = arith.addf %52, %58 : vector<16x120xf32>
    %c8_i32 = arith.constant 8 : i32
    %60 = vector.broadcast %c8_i32 : i32 to vector<16x120xi32>
    %61 = arith.cmpi eq, %2, %60 : vector<16x120xi32>
    %c8 = arith.constant 8 : index
    %c0_28 = arith.constant 0 : index
    %c0_29 = arith.constant 0 : index
    %62 = vector.load %arg2[%c8, %c0_28, %c0_29] : memref<32x16x120xf32, #tpu.memory_space<vmem>>, vector<1x16x120xf32>
    %63 = vector.shape_cast %62 : vector<1x16x120xf32> to vector<16x120xf32>
    %cst_30 = arith.constant 0.000000e+00 : f32
    %64 = vector.broadcast %cst_30 : f32 to vector<16x120xf32>
    %65 = arith.select %61, %63, %64 : vector<16x120xi1>, vector<16x120xf32>
    %66 = arith.addf %59, %65 : vector<16x120xf32>
    %c9_i32 = arith.constant 9 : i32
    %67 = vector.broadcast %c9_i32 : i32 to vector<16x120xi32>
    %68 = arith.cmpi eq, %2, %67 : vector<16x120xi32>
    %c9 = arith.constant 9 : index
    %c0_31 = arith.constant 0 : index
    %c0_32 = arith.constant 0 : index
    %69 = vector.load %arg2[%c9, %c0_31, %c0_32] : memref<32x16x120xf32, #tpu.memory_space<vmem>>, vector<1x16x120xf32>
    %70 = vector.shape_cast %69 : vector<1x16x120xf32> to vector<16x120xf32>
    %cst_33 = arith.constant 0.000000e+00 : f32
    %71 = vector.broadcast %cst_33 : f32 to vector<16x120xf32>
    %72 = arith.select %68, %70, %71 : vector<16x120xi1>, vector<16x120xf32>
    %73 = arith.addf %66, %72 : vector<16x120xf32>
    %c10_i32 = arith.constant 10 : i32
    %74 = vector.broadcast %c10_i32 : i32 to vector<16x120xi32>
    %75 = arith.cmpi eq, %2, %74 : vector<16x120xi32>
    %c10 = arith.constant 10 : index
    %c0_34 = arith.constant 0 : index
    %c0_35 = arith.constant 0 : index
    %76 = vector.load %arg2[%c10, %c0_34, %c0_35] : memref<32x16x120xf32, #tpu.memory_space<vmem>>, vector<1x16x120xf32>
    %77 = vector.shape_cast %76 : vector<1x16x120xf32> to vector<16x120xf32>
    %cst_36 = arith.constant 0.000000e+00 : f32
    %78 = vector.broadcast %cst_36 : f32 to vector<16x120xf32>
    %79 = arith.select %75, %77, %78 : vector<16x120xi1>, vector<16x120xf32>
    %80 = arith.addf %73, %79 : vector<16x120xf32>
    %c11_i32 = arith.constant 11 : i32
    %81 = vector.broadcast %c11_i32 : i32 to vector<16x120xi32>
    %82 = arith.cmpi eq, %2, %81 : vector<16x120xi32>
    %c11 = arith.constant 11 : index
    %c0_37 = arith.constant 0 : index
    %c0_38 = arith.constant 0 : index
    %83 = vector.load %arg2[%c11, %c0_37, %c0_38] : memref<32x16x120xf32, #tpu.memory_space<vmem>>, vector<1x16x120xf32>
    %84 = vector.shape_cast %83 : vector<1x16x120xf32> to vector<16x120xf32>
    %cst_39 = arith.constant 0.000000e+00 : f32
    %85 = vector.broadcast %cst_39 : f32 to vector<16x120xf32>
    %86 = arith.select %82, %84, %85 : vector<16x120xi1>, vector<16x120xf32>
    %87 = arith.addf %80, %86 : vector<16x120xf32>
    %c12_i32 = arith.constant 12 : i32
    %88 = vector.broadcast %c12_i32 : i32 to vector<16x120xi32>
    %89 = arith.cmpi eq, %2, %88 : vector<16x120xi32>
    %c12 = arith.constant 12 : index
    %c0_40 = arith.constant 0 : index
    %c0_41 = arith.constant 0 : index
    %90 = vector.load %arg2[%c12, %c0_40, %c0_41] : memref<32x16x120xf32, #tpu.memory_space<vmem>>, vector<1x16x120xf32>
    %91 = vector.shape_cast %90 : vector<1x16x120xf32> to vector<16x120xf32>
    %cst_42 = arith.constant 0.000000e+00 : f32
    %92 = vector.broadcast %cst_42 : f32 to vector<16x120xf32>
    %93 = arith.select %89, %91, %92 : vector<16x120xi1>, vector<16x120xf32>
    %94 = arith.addf %87, %93 : vector<16x120xf32>
    %c13_i32 = arith.constant 13 : i32
    %95 = vector.broadcast %c13_i32 : i32 to vector<16x120xi32>
    %96 = arith.cmpi eq, %2, %95 : vector<16x120xi32>
    %c13 = arith.constant 13 : index
    %c0_43 = arith.constant 0 : index
    %c0_44 = arith.constant 0 : index
    %97 = vector.load %arg2[%c13, %c0_43, %c0_44] : memref<32x16x120xf32, #tpu.memory_space<vmem>>, vector<1x16x120xf32>
    %98 = vector.shape_cast %97 : vector<1x16x120xf32> to vector<16x120xf32>
    %cst_45 = arith.constant 0.000000e+00 : f32
    %99 = vector.broadcast %cst_45 : f32 to vector<16x120xf32>
    %100 = arith.select %96, %98, %99 : vector<16x120xi1>, vector<16x120xf32>
    %101 = arith.addf %94, %100 : vector<16x120xf32>
    %c14_i32 = arith.constant 14 : i32
    %102 = vector.broadcast %c14_i32 : i32 to vector<16x120xi32>
    %103 = arith.cmpi eq, %2, %102 : vector<16x120xi32>
    %c14 = arith.constant 14 : index
    %c0_46 = arith.constant 0 : index
    %c0_47 = arith.constant 0 : index
    %104 = vector.load %arg2[%c14, %c0_46, %c0_47] : memref<32x16x120xf32, #tpu.memory_space<vmem>>, vector<1x16x120xf32>
    %105 = vector.shape_cast %104 : vector<1x16x120xf32> to vector<16x120xf32>
    %cst_48 = arith.constant 0.000000e+00 : f32
    %106 = vector.broadcast %cst_48 : f32 to vector<16x120xf32>
    %107 = arith.select %103, %105, %106 : vector<16x120xi1>, vector<16x120xf32>
    %108 = arith.addf %101, %107 : vector<16x120xf32>
    %c15_i32 = arith.constant 15 : i32
    %109 = vector.broadcast %c15_i32 : i32 to vector<16x120xi32>
    %110 = arith.cmpi eq, %2, %109 : vector<16x120xi32>
    %c15 = arith.constant 15 : index
    %c0_49 = arith.constant 0 : index
    %c0_50 = arith.constant 0 : index
    %111 = vector.load %arg2[%c15, %c0_49, %c0_50] : memref<32x16x120xf32, #tpu.memory_space<vmem>>, vector<1x16x120xf32>
    %112 = vector.shape_cast %111 : vector<1x16x120xf32> to vector<16x120xf32>
    %cst_51 = arith.constant 0.000000e+00 : f32
    %113 = vector.broadcast %cst_51 : f32 to vector<16x120xf32>
    %114 = arith.select %110, %112, %113 : vector<16x120xi1>, vector<16x120xf32>
    %115 = arith.addf %108, %114 : vector<16x120xf32>
    %c16_i32 = arith.constant 16 : i32
    %116 = vector.broadcast %c16_i32 : i32 to vector<16x120xi32>
    %117 = arith.cmpi eq, %2, %116 : vector<16x120xi32>
    %c16 = arith.constant 16 : index
    %c0_52 = arith.constant 0 : index
    %c0_53 = arith.constant 0 : index
    %118 = vector.load %arg2[%c16, %c0_52, %c0_53] : memref<32x16x120xf32, #tpu.memory_space<vmem>>, vector<1x16x120xf32>
    %119 = vector.shape_cast %118 : vector<1x16x120xf32> to vector<16x120xf32>
    %cst_54 = arith.constant 0.000000e+00 : f32
    %120 = vector.broadcast %cst_54 : f32 to vector<16x120xf32>
    %121 = arith.select %117, %119, %120 : vector<16x120xi1>, vector<16x120xf32>
    %122 = arith.addf %115, %121 : vector<16x120xf32>
    %c17_i32 = arith.constant 17 : i32
    %123 = vector.broadcast %c17_i32 : i32 to vector<16x120xi32>
    %124 = arith.cmpi eq, %2, %123 : vector<16x120xi32>
    %c17 = arith.constant 17 : index
    %c0_55 = arith.constant 0 : index
    %c0_56 = arith.constant 0 : index
    %125 = vector.load %arg2[%c17, %c0_55, %c0_56] : memref<32x16x120xf32, #tpu.memory_space<vmem>>, vector<1x16x120xf32>
    %126 = vector.shape_cast %125 : vector<1x16x120xf32> to vector<16x120xf32>
    %cst_57 = arith.constant 0.000000e+00 : f32
    %127 = vector.broadcast %cst_57 : f32 to vector<16x120xf32>
    %128 = arith.select %124, %126, %127 : vector<16x120xi1>, vector<16x120xf32>
    %129 = arith.addf %122, %128 : vector<16x120xf32>
    %c18_i32 = arith.constant 18 : i32
    %130 = vector.broadcast %c18_i32 : i32 to vector<16x120xi32>
    %131 = arith.cmpi eq, %2, %130 : vector<16x120xi32>
    %c18 = arith.constant 18 : index
    %c0_58 = arith.constant 0 : index
    %c0_59 = arith.constant 0 : index
    %132 = vector.load %arg2[%c18, %c0_58, %c0_59] : memref<32x16x120xf32, #tpu.memory_space<vmem>>, vector<1x16x120xf32>
    %133 = vector.shape_cast %132 : vector<1x16x120xf32> to vector<16x120xf32>
    %cst_60 = arith.constant 0.000000e+00 : f32
    %134 = vector.broadcast %cst_60 : f32 to vector<16x120xf32>
    %135 = arith.select %131, %133, %134 : vector<16x120xi1>, vector<16x120xf32>
    %136 = arith.addf %129, %135 : vector<16x120xf32>
    %c19_i32 = arith.constant 19 : i32
    %137 = vector.broadcast %c19_i32 : i32 to vector<16x120xi32>
    %138 = arith.cmpi eq, %2, %137 : vector<16x120xi32>
    %c19 = arith.constant 19 : index
    %c0_61 = arith.constant 0 : index
    %c0_62 = arith.constant 0 : index
    %139 = vector.load %arg2[%c19, %c0_61, %c0_62] : memref<32x16x120xf32, #tpu.memory_space<vmem>>, vector<1x16x120xf32>
    %140 = vector.shape_cast %139 : vector<1x16x120xf32> to vector<16x120xf32>
    %cst_63 = arith.constant 0.000000e+00 : f32
    %141 = vector.broadcast %cst_63 : f32 to vector<16x120xf32>
    %142 = arith.select %138, %140, %141 : vector<16x120xi1>, vector<16x120xf32>
    %143 = arith.addf %136, %142 : vector<16x120xf32>
    %c20_i32 = arith.constant 20 : i32
    %144 = vector.broadcast %c20_i32 : i32 to vector<16x120xi32>
    %145 = arith.cmpi eq, %2, %144 : vector<16x120xi32>
    %c20 = arith.constant 20 : index
    %c0_64 = arith.constant 0 : index
    %c0_65 = arith.constant 0 : index
    %146 = vector.load %arg2[%c20, %c0_64, %c0_65] : memref<32x16x120xf32, #tpu.memory_space<vmem>>, vector<1x16x120xf32>
    %147 = vector.shape_cast %146 : vector<1x16x120xf32> to vector<16x120xf32>
    %cst_66 = arith.constant 0.000000e+00 : f32
    %148 = vector.broadcast %cst_66 : f32 to vector<16x120xf32>
    %149 = arith.select %145, %147, %148 : vector<16x120xi1>, vector<16x120xf32>
    %150 = arith.addf %143, %149 : vector<16x120xf32>
    %c21_i32 = arith.constant 21 : i32
    %151 = vector.broadcast %c21_i32 : i32 to vector<16x120xi32>
    %152 = arith.cmpi eq, %2, %151 : vector<16x120xi32>
    %c21 = arith.constant 21 : index
    %c0_67 = arith.constant 0 : index
    %c0_68 = arith.constant 0 : index
    %153 = vector.load %arg2[%c21, %c0_67, %c0_68] : memref<32x16x120xf32, #tpu.memory_space<vmem>>, vector<1x16x120xf32>
    %154 = vector.shape_cast %153 : vector<1x16x120xf32> to vector<16x120xf32>
    %cst_69 = arith.constant 0.000000e+00 : f32
    %155 = vector.broadcast %cst_69 : f32 to vector<16x120xf32>
    %156 = arith.select %152, %154, %155 : vector<16x120xi1>, vector<16x120xf32>
    %157 = arith.addf %150, %156 : vector<16x120xf32>
    %c22_i32 = arith.constant 22 : i32
    %158 = vector.broadcast %c22_i32 : i32 to vector<16x120xi32>
    %159 = arith.cmpi eq, %2, %158 : vector<16x120xi32>
    %c22 = arith.constant 22 : index
    %c0_70 = arith.constant 0 : index
    %c0_71 = arith.constant 0 : index
    %160 = vector.load %arg2[%c22, %c0_70, %c0_71] : memref<32x16x120xf32, #tpu.memory_space<vmem>>, vector<1x16x120xf32>
    %161 = vector.shape_cast %160 : vector<1x16x120xf32> to vector<16x120xf32>
    %cst_72 = arith.constant 0.000000e+00 : f32
    %162 = vector.broadcast %cst_72 : f32 to vector<16x120xf32>
    %163 = arith.select %159, %161, %162 : vector<16x120xi1>, vector<16x120xf32>
    %164 = arith.addf %157, %163 : vector<16x120xf32>
    %c23_i32 = arith.constant 23 : i32
    %165 = vector.broadcast %c23_i32 : i32 to vector<16x120xi32>
    %166 = arith.cmpi eq, %2, %165 : vector<16x120xi32>
    %c23 = arith.constant 23 : index
    %c0_73 = arith.constant 0 : index
    %c0_74 = arith.constant 0 : index
    %167 = vector.load %arg2[%c23, %c0_73, %c0_74] : memref<32x16x120xf32, #tpu.memory_space<vmem>>, vector<1x16x120xf32>
    %168 = vector.shape_cast %167 : vector<1x16x120xf32> to vector<16x120xf32>
    %cst_75 = arith.constant 0.000000e+00 : f32
    %169 = vector.broadcast %cst_75 : f32 to vector<16x120xf32>
    %170 = arith.select %166, %168, %169 : vector<16x120xi1>, vector<16x120xf32>
    %171 = arith.addf %164, %170 : vector<16x120xf32>
    %c24_i32 = arith.constant 24 : i32
    %172 = vector.broadcast %c24_i32 : i32 to vector<16x120xi32>
    %173 = arith.cmpi eq, %2, %172 : vector<16x120xi32>
    %c24 = arith.constant 24 : index
    %c0_76 = arith.constant 0 : index
    %c0_77 = arith.constant 0 : index
    %174 = vector.load %arg2[%c24, %c0_76, %c0_77] : memref<32x16x120xf32, #tpu.memory_space<vmem>>, vector<1x16x120xf32>
    %175 = vector.shape_cast %174 : vector<1x16x120xf32> to vector<16x120xf32>
    %cst_78 = arith.constant 0.000000e+00 : f32
    %176 = vector.broadcast %cst_78 : f32 to vector<16x120xf32>
    %177 = arith.select %173, %175, %176 : vector<16x120xi1>, vector<16x120xf32>
    %178 = arith.addf %171, %177 : vector<16x120xf32>
    %c25_i32 = arith.constant 25 : i32
    %179 = vector.broadcast %c25_i32 : i32 to vector<16x120xi32>
    %180 = arith.cmpi eq, %2, %179 : vector<16x120xi32>
    %c25 = arith.constant 25 : index
    %c0_79 = arith.constant 0 : index
    %c0_80 = arith.constant 0 : index
    %181 = vector.load %arg2[%c25, %c0_79, %c0_80] : memref<32x16x120xf32, #tpu.memory_space<vmem>>, vector<1x16x120xf32>
    %182 = vector.shape_cast %181 : vector<1x16x120xf32> to vector<16x120xf32>
    %cst_81 = arith.constant 0.000000e+00 : f32
    %183 = vector.broadcast %cst_81 : f32 to vector<16x120xf32>
    %184 = arith.select %180, %182, %183 : vector<16x120xi1>, vector<16x120xf32>
    %185 = arith.addf %178, %184 : vector<16x120xf32>
    %c26_i32 = arith.constant 26 : i32
    %186 = vector.broadcast %c26_i32 : i32 to vector<16x120xi32>
    %187 = arith.cmpi eq, %2, %186 : vector<16x120xi32>
    %c26 = arith.constant 26 : index
    %c0_82 = arith.constant 0 : index
    %c0_83 = arith.constant 0 : index
    %188 = vector.load %arg2[%c26, %c0_82, %c0_83] : memref<32x16x120xf32, #tpu.memory_space<vmem>>, vector<1x16x120xf32>
    %189 = vector.shape_cast %188 : vector<1x16x120xf32> to vector<16x120xf32>
    %cst_84 = arith.constant 0.000000e+00 : f32
    %190 = vector.broadcast %cst_84 : f32 to vector<16x120xf32>
    %191 = arith.select %187, %189, %190 : vector<16x120xi1>, vector<16x120xf32>
    %192 = arith.addf %185, %191 : vector<16x120xf32>
    %c27_i32 = arith.constant 27 : i32
    %193 = vector.broadcast %c27_i32 : i32 to vector<16x120xi32>
    %194 = arith.cmpi eq, %2, %193 : vector<16x120xi32>
    %c27 = arith.constant 27 : index
    %c0_85 = arith.constant 0 : index
    %c0_86 = arith.constant 0 : index
    %195 = vector.load %arg2[%c27, %c0_85, %c0_86] : memref<32x16x120xf32, #tpu.memory_space<vmem>>, vector<1x16x120xf32>
    %196 = vector.shape_cast %195 : vector<1x16x120xf32> to vector<16x120xf32>
    %cst_87 = arith.constant 0.000000e+00 : f32
    %197 = vector.broadcast %cst_87 : f32 to vector<16x120xf32>
    %198 = arith.select %194, %196, %197 : vector<16x120xi1>, vector<16x120xf32>
    %199 = arith.addf %192, %198 : vector<16x120xf32>
    %c28_i32 = arith.constant 28 : i32
    %200 = vector.broadcast %c28_i32 : i32 to vector<16x120xi32>
    %201 = arith.cmpi eq, %2, %200 : vector<16x120xi32>
    %c28 = arith.constant 28 : index
    %c0_88 = arith.constant 0 : index
    %c0_89 = arith.constant 0 : index
    %202 = vector.load %arg2[%c28, %c0_88, %c0_89] : memref<32x16x120xf32, #tpu.memory_space<vmem>>, vector<1x16x120xf32>
    %203 = vector.shape_cast %202 : vector<1x16x120xf32> to vector<16x120xf32>
    %cst_90 = arith.constant 0.000000e+00 : f32
    %204 = vector.broadcast %cst_90 : f32 to vector<16x120xf32>
    %205 = arith.select %201, %203, %204 : vector<16x120xi1>, vector<16x120xf32>
    %206 = arith.addf %199, %205 : vector<16x120xf32>
    %c29_i32 = arith.constant 29 : i32
    %207 = vector.broadcast %c29_i32 : i32 to vector<16x120xi32>
    %208 = arith.cmpi eq, %2, %207 : vector<16x120xi32>
    %c29 = arith.constant 29 : index
    %c0_91 = arith.constant 0 : index
    %c0_92 = arith.constant 0 : index
    %209 = vector.load %arg2[%c29, %c0_91, %c0_92] : memref<32x16x120xf32, #tpu.memory_space<vmem>>, vector<1x16x120xf32>
    %210 = vector.shape_cast %209 : vector<1x16x120xf32> to vector<16x120xf32>
    %cst_93 = arith.constant 0.000000e+00 : f32
    %211 = vector.broadcast %cst_93 : f32 to vector<16x120xf32>
    %212 = arith.select %208, %210, %211 : vector<16x120xi1>, vector<16x120xf32>
    %213 = arith.addf %206, %212 : vector<16x120xf32>
    %c30_i32 = arith.constant 30 : i32
    %214 = vector.broadcast %c30_i32 : i32 to vector<16x120xi32>
    %215 = arith.cmpi eq, %2, %214 : vector<16x120xi32>
    %c30 = arith.constant 30 : index
    %c0_94 = arith.constant 0 : index
    %c0_95 = arith.constant 0 : index
    %216 = vector.load %arg2[%c30, %c0_94, %c0_95] : memref<32x16x120xf32, #tpu.memory_space<vmem>>, vector<1x16x120xf32>
    %217 = vector.shape_cast %216 : vector<1x16x120xf32> to vector<16x120xf32>
    %cst_96 = arith.constant 0.000000e+00 : f32
    %218 = vector.broadcast %cst_96 : f32 to vector<16x120xf32>
    %219 = arith.select %215, %217, %218 : vector<16x120xi1>, vector<16x120xf32>
    %220 = arith.addf %213, %219 : vector<16x120xf32>
    %c31_i32 = arith.constant 31 : i32
    %221 = vector.broadcast %c31_i32 : i32 to vector<16x120xi32>
    %222 = arith.cmpi eq, %2, %221 : vector<16x120xi32>
    %c31 = arith.constant 31 : index
    %c0_97 = arith.constant 0 : index
    %c0_98 = arith.constant 0 : index
    %223 = vector.load %arg2[%c31, %c0_97, %c0_98] : memref<32x16x120xf32, #tpu.memory_space<vmem>>, vector<1x16x120xf32>
    %224 = vector.shape_cast %223 : vector<1x16x120xf32> to vector<16x120xf32>
    %cst_99 = arith.constant 0.000000e+00 : f32
    %225 = vector.broadcast %cst_99 : f32 to vector<16x120xf32>
    %226 = arith.select %222, %224, %225 : vector<16x120xi1>, vector<16x120xf32>
    %227 = arith.addf %220, %226 : vector<16x120xf32>
    %228 = vector.extract_strided_slice %227 {offsets = [0, 0], sizes = [16, 119], strides = [1, 1]} : vector<16x120xf32> to vector<16x119xf32>
    %229 = tpu.concatenate %0, %228 in 1 : vector<16x1xf32>, vector<16x119xf32> -> vector<16x120xf32>
    %230 = vector.extract_strided_slice %227 {offsets = [0, 1], sizes = [16, 119], strides = [1, 1]} : vector<16x120xf32> to vector<16x119xf32>
    %231 = tpu.concatenate %230, %0 in 1 : vector<16x119xf32>, vector<16x1xf32> -> vector<16x120xf32>
    %232 = tpu.concatenate %229, %227, %231 in 0 : vector<16x120xf32>, vector<16x120xf32>, vector<16x120xf32> -> vector<48x120xf32>
    %c1_100 = arith.constant 1 : index
    %c0_101 = arith.constant 0 : index
    %c0_102 = arith.constant 0 : index
    %233 = vector.load %arg1[%c1_100, %c0_101, %c0_102] : memref<2x16x120xi32, #tpu.memory_space<vmem>>, vector<1x16x120xi32>
    %234 = vector.shape_cast %233 : vector<1x16x120xi32> to vector<16x120xi32>
    %cst_103 = arith.constant 0.000000e+00 : f32
    %235 = vector.broadcast %cst_103 : f32 to vector<16x120xf32>
    %c0_i32_104 = arith.constant 0 : i32
    %236 = vector.broadcast %c0_i32_104 : i32 to vector<16x120xi32>
    %237 = arith.cmpi eq, %234, %236 : vector<16x120xi32>
    %c0_105 = arith.constant 0 : index
    %c0_106 = arith.constant 0 : index
    %c0_107 = arith.constant 0 : index
    %238 = vector.load %arg2[%c0_105, %c0_106, %c0_107] : memref<32x16x120xf32, #tpu.memory_space<vmem>>, vector<1x16x120xf32>
    %239 = vector.shape_cast %238 : vector<1x16x120xf32> to vector<16x120xf32>
    %cst_108 = arith.constant 0.000000e+00 : f32
    %240 = vector.broadcast %cst_108 : f32 to vector<16x120xf32>
    %241 = arith.select %237, %239, %240 : vector<16x120xi1>, vector<16x120xf32>
    %242 = arith.addf %235, %241 : vector<16x120xf32>
    %c1_i32_109 = arith.constant 1 : i32
    %243 = vector.broadcast %c1_i32_109 : i32 to vector<16x120xi32>
    %244 = arith.cmpi eq, %234, %243 : vector<16x120xi32>
    %c1_110 = arith.constant 1 : index
    %c0_111 = arith.constant 0 : index
    %c0_112 = arith.constant 0 : index
    %245 = vector.load %arg2[%c1_110, %c0_111, %c0_112] : memref<32x16x120xf32, #tpu.memory_space<vmem>>, vector<1x16x120xf32>
    %246 = vector.shape_cast %245 : vector<1x16x120xf32> to vector<16x120xf32>
    %cst_113 = arith.constant 0.000000e+00 : f32
    %247 = vector.broadcast %cst_113 : f32 to vector<16x120xf32>
    %248 = arith.select %244, %246, %247 : vector<16x120xi1>, vector<16x120xf32>
    %249 = arith.addf %242, %248 : vector<16x120xf32>
    %c2_i32_114 = arith.constant 2 : i32
    %250 = vector.broadcast %c2_i32_114 : i32 to vector<16x120xi32>
    %251 = arith.cmpi eq, %234, %250 : vector<16x120xi32>
    %c2_115 = arith.constant 2 : index
    %c0_116 = arith.constant 0 : index
    %c0_117 = arith.constant 0 : index
    %252 = vector.load %arg2[%c2_115, %c0_116, %c0_117] : memref<32x16x120xf32, #tpu.memory_space<vmem>>, vector<1x16x120xf32>
    %253 = vector.shape_cast %252 : vector<1x16x120xf32> to vector<16x120xf32>
    %cst_118 = arith.constant 0.000000e+00 : f32
    %254 = vector.broadcast %cst_118 : f32 to vector<16x120xf32>
    %255 = arith.select %251, %253, %254 : vector<16x120xi1>, vector<16x120xf32>
    %256 = arith.addf %249, %255 : vector<16x120xf32>
    %c3_i32_119 = arith.constant 3 : i32
    %257 = vector.broadcast %c3_i32_119 : i32 to vector<16x120xi32>
    %258 = arith.cmpi eq, %234, %257 : vector<16x120xi32>
    %c3_120 = arith.constant 3 : index
    %c0_121 = arith.constant 0 : index
    %c0_122 = arith.constant 0 : index
    %259 = vector.load %arg2[%c3_120, %c0_121, %c0_122] : memref<32x16x120xf32, #tpu.memory_space<vmem>>, vector<1x16x120xf32>
    %260 = vector.shape_cast %259 : vector<1x16x120xf32> to vector<16x120xf32>
    %cst_123 = arith.constant 0.000000e+00 : f32
    %261 = vector.broadcast %cst_123 : f32 to vector<16x120xf32>
    %262 = arith.select %258, %260, %261 : vector<16x120xi1>, vector<16x120xf32>
    %263 = arith.addf %256, %262 : vector<16x120xf32>
    %c4_i32_124 = arith.constant 4 : i32
    %264 = vector.broadcast %c4_i32_124 : i32 to vector<16x120xi32>
    %265 = arith.cmpi eq, %234, %264 : vector<16x120xi32>
    %c4_125 = arith.constant 4 : index
    %c0_126 = arith.constant 0 : index
    %c0_127 = arith.constant 0 : index
    %266 = vector.load %arg2[%c4_125, %c0_126, %c0_127] : memref<32x16x120xf32, #tpu.memory_space<vmem>>, vector<1x16x120xf32>
    %267 = vector.shape_cast %266 : vector<1x16x120xf32> to vector<16x120xf32>
    %cst_128 = arith.constant 0.000000e+00 : f32
    %268 = vector.broadcast %cst_128 : f32 to vector<16x120xf32>
    %269 = arith.select %265, %267, %268 : vector<16x120xi1>, vector<16x120xf32>
    %270 = arith.addf %263, %269 : vector<16x120xf32>
    %c5_i32_129 = arith.constant 5 : i32
    %271 = vector.broadcast %c5_i32_129 : i32 to vector<16x120xi32>
    %272 = arith.cmpi eq, %234, %271 : vector<16x120xi32>
    %c5_130 = arith.constant 5 : index
    %c0_131 = arith.constant 0 : index
    %c0_132 = arith.constant 0 : index
    %273 = vector.load %arg2[%c5_130, %c0_131, %c0_132] : memref<32x16x120xf32, #tpu.memory_space<vmem>>, vector<1x16x120xf32>
    %274 = vector.shape_cast %273 : vector<1x16x120xf32> to vector<16x120xf32>
    %cst_133 = arith.constant 0.000000e+00 : f32
    %275 = vector.broadcast %cst_133 : f32 to vector<16x120xf32>
    %276 = arith.select %272, %274, %275 : vector<16x120xi1>, vector<16x120xf32>
    %277 = arith.addf %270, %276 : vector<16x120xf32>
    %c6_i32_134 = arith.constant 6 : i32
    %278 = vector.broadcast %c6_i32_134 : i32 to vector<16x120xi32>
    %279 = arith.cmpi eq, %234, %278 : vector<16x120xi32>
    %c6_135 = arith.constant 6 : index
    %c0_136 = arith.constant 0 : index
    %c0_137 = arith.constant 0 : index
    %280 = vector.load %arg2[%c6_135, %c0_136, %c0_137] : memref<32x16x120xf32, #tpu.memory_space<vmem>>, vector<1x16x120xf32>
    %281 = vector.shape_cast %280 : vector<1x16x120xf32> to vector<16x120xf32>
    %cst_138 = arith.constant 0.000000e+00 : f32
    %282 = vector.broadcast %cst_138 : f32 to vector<16x120xf32>
    %283 = arith.select %279, %281, %282 : vector<16x120xi1>, vector<16x120xf32>
    %284 = arith.addf %277, %283 : vector<16x120xf32>
    %c7_i32_139 = arith.constant 7 : i32
    %285 = vector.broadcast %c7_i32_139 : i32 to vector<16x120xi32>
    %286 = arith.cmpi eq, %234, %285 : vector<16x120xi32>
    %c7_140 = arith.constant 7 : index
    %c0_141 = arith.constant 0 : index
    %c0_142 = arith.constant 0 : index
    %287 = vector.load %arg2[%c7_140, %c0_141, %c0_142] : memref<32x16x120xf32, #tpu.memory_space<vmem>>, vector<1x16x120xf32>
    %288 = vector.shape_cast %287 : vector<1x16x120xf32> to vector<16x120xf32>
    %cst_143 = arith.constant 0.000000e+00 : f32
    %289 = vector.broadcast %cst_143 : f32 to vector<16x120xf32>
    %290 = arith.select %286, %288, %289 : vector<16x120xi1>, vector<16x120xf32>
    %291 = arith.addf %284, %290 : vector<16x120xf32>
    %c8_i32_144 = arith.constant 8 : i32
    %292 = vector.broadcast %c8_i32_144 : i32 to vector<16x120xi32>
    %293 = arith.cmpi eq, %234, %292 : vector<16x120xi32>
    %c8_145 = arith.constant 8 : index
    %c0_146 = arith.constant 0 : index
    %c0_147 = arith.constant 0 : index
    %294 = vector.load %arg2[%c8_145, %c0_146, %c0_147] : memref<32x16x120xf32, #tpu.memory_space<vmem>>, vector<1x16x120xf32>
    %295 = vector.shape_cast %294 : vector<1x16x120xf32> to vector<16x120xf32>
    %cst_148 = arith.constant 0.000000e+00 : f32
    %296 = vector.broadcast %cst_148 : f32 to vector<16x120xf32>
    %297 = arith.select %293, %295, %296 : vector<16x120xi1>, vector<16x120xf32>
    %298 = arith.addf %291, %297 : vector<16x120xf32>
    %c9_i32_149 = arith.constant 9 : i32
    %299 = vector.broadcast %c9_i32_149 : i32 to vector<16x120xi32>
    %300 = arith.cmpi eq, %234, %299 : vector<16x120xi32>
    %c9_150 = arith.constant 9 : index
    %c0_151 = arith.constant 0 : index
    %c0_152 = arith.constant 0 : index
    %301 = vector.load %arg2[%c9_150, %c0_151, %c0_152] : memref<32x16x120xf32, #tpu.memory_space<vmem>>, vector<1x16x120xf32>
    %302 = vector.shape_cast %301 : vector<1x16x120xf32> to vector<16x120xf32>
    %cst_153 = arith.constant 0.000000e+00 : f32
    %303 = vector.broadcast %cst_153 : f32 to vector<16x120xf32>
    %304 = arith.select %300, %302, %303 : vector<16x120xi1>, vector<16x120xf32>
    %305 = arith.addf %298, %304 : vector<16x120xf32>
    %c10_i32_154 = arith.constant 10 : i32
    %306 = vector.broadcast %c10_i32_154 : i32 to vector<16x120xi32>
    %307 = arith.cmpi eq, %234, %306 : vector<16x120xi32>
    %c10_155 = arith.constant 10 : index
    %c0_156 = arith.constant 0 : index
    %c0_157 = arith.constant 0 : index
    %308 = vector.load %arg2[%c10_155, %c0_156, %c0_157] : memref<32x16x120xf32, #tpu.memory_space<vmem>>, vector<1x16x120xf32>
    %309 = vector.shape_cast %308 : vector<1x16x120xf32> to vector<16x120xf32>
    %cst_158 = arith.constant 0.000000e+00 : f32
    %310 = vector.broadcast %cst_158 : f32 to vector<16x120xf32>
    %311 = arith.select %307, %309, %310 : vector<16x120xi1>, vector<16x120xf32>
    %312 = arith.addf %305, %311 : vector<16x120xf32>
    %c11_i32_159 = arith.constant 11 : i32
    %313 = vector.broadcast %c11_i32_159 : i32 to vector<16x120xi32>
    %314 = arith.cmpi eq, %234, %313 : vector<16x120xi32>
    %c11_160 = arith.constant 11 : index
    %c0_161 = arith.constant 0 : index
    %c0_162 = arith.constant 0 : index
    %315 = vector.load %arg2[%c11_160, %c0_161, %c0_162] : memref<32x16x120xf32, #tpu.memory_space<vmem>>, vector<1x16x120xf32>
    %316 = vector.shape_cast %315 : vector<1x16x120xf32> to vector<16x120xf32>
    %cst_163 = arith.constant 0.000000e+00 : f32
    %317 = vector.broadcast %cst_163 : f32 to vector<16x120xf32>
    %318 = arith.select %314, %316, %317 : vector<16x120xi1>, vector<16x120xf32>
    %319 = arith.addf %312, %318 : vector<16x120xf32>
    %c12_i32_164 = arith.constant 12 : i32
    %320 = vector.broadcast %c12_i32_164 : i32 to vector<16x120xi32>
    %321 = arith.cmpi eq, %234, %320 : vector<16x120xi32>
    %c12_165 = arith.constant 12 : index
    %c0_166 = arith.constant 0 : index
    %c0_167 = arith.constant 0 : index
    %322 = vector.load %arg2[%c12_165, %c0_166, %c0_167] : memref<32x16x120xf32, #tpu.memory_space<vmem>>, vector<1x16x120xf32>
    %323 = vector.shape_cast %322 : vector<1x16x120xf32> to vector<16x120xf32>
    %cst_168 = arith.constant 0.000000e+00 : f32
    %324 = vector.broadcast %cst_168 : f32 to vector<16x120xf32>
    %325 = arith.select %321, %323, %324 : vector<16x120xi1>, vector<16x120xf32>
    %326 = arith.addf %319, %325 : vector<16x120xf32>
    %c13_i32_169 = arith.constant 13 : i32
    %327 = vector.broadcast %c13_i32_169 : i32 to vector<16x120xi32>
    %328 = arith.cmpi eq, %234, %327 : vector<16x120xi32>
    %c13_170 = arith.constant 13 : index
    %c0_171 = arith.constant 0 : index
    %c0_172 = arith.constant 0 : index
    %329 = vector.load %arg2[%c13_170, %c0_171, %c0_172] : memref<32x16x120xf32, #tpu.memory_space<vmem>>, vector<1x16x120xf32>
    %330 = vector.shape_cast %329 : vector<1x16x120xf32> to vector<16x120xf32>
    %cst_173 = arith.constant 0.000000e+00 : f32
    %331 = vector.broadcast %cst_173 : f32 to vector<16x120xf32>
    %332 = arith.select %328, %330, %331 : vector<16x120xi1>, vector<16x120xf32>
    %333 = arith.addf %326, %332 : vector<16x120xf32>
    %c14_i32_174 = arith.constant 14 : i32
    %334 = vector.broadcast %c14_i32_174 : i32 to vector<16x120xi32>
    %335 = arith.cmpi eq, %234, %334 : vector<16x120xi32>
    %c14_175 = arith.constant 14 : index
    %c0_176 = arith.constant 0 : index
    %c0_177 = arith.constant 0 : index
    %336 = vector.load %arg2[%c14_175, %c0_176, %c0_177] : memref<32x16x120xf32, #tpu.memory_space<vmem>>, vector<1x16x120xf32>
    %337 = vector.shape_cast %336 : vector<1x16x120xf32> to vector<16x120xf32>
    %cst_178 = arith.constant 0.000000e+00 : f32
    %338 = vector.broadcast %cst_178 : f32 to vector<16x120xf32>
    %339 = arith.select %335, %337, %338 : vector<16x120xi1>, vector<16x120xf32>
    %340 = arith.addf %333, %339 : vector<16x120xf32>
    %c15_i32_179 = arith.constant 15 : i32
    %341 = vector.broadcast %c15_i32_179 : i32 to vector<16x120xi32>
    %342 = arith.cmpi eq, %234, %341 : vector<16x120xi32>
    %c15_180 = arith.constant 15 : index
    %c0_181 = arith.constant 0 : index
    %c0_182 = arith.constant 0 : index
    %343 = vector.load %arg2[%c15_180, %c0_181, %c0_182] : memref<32x16x120xf32, #tpu.memory_space<vmem>>, vector<1x16x120xf32>
    %344 = vector.shape_cast %343 : vector<1x16x120xf32> to vector<16x120xf32>
    %cst_183 = arith.constant 0.000000e+00 : f32
    %345 = vector.broadcast %cst_183 : f32 to vector<16x120xf32>
    %346 = arith.select %342, %344, %345 : vector<16x120xi1>, vector<16x120xf32>
    %347 = arith.addf %340, %346 : vector<16x120xf32>
    %c16_i32_184 = arith.constant 16 : i32
    %348 = vector.broadcast %c16_i32_184 : i32 to vector<16x120xi32>
    %349 = arith.cmpi eq, %234, %348 : vector<16x120xi32>
    %c16_185 = arith.constant 16 : index
    %c0_186 = arith.constant 0 : index
    %c0_187 = arith.constant 0 : index
    %350 = vector.load %arg2[%c16_185, %c0_186, %c0_187] : memref<32x16x120xf32, #tpu.memory_space<vmem>>, vector<1x16x120xf32>
    %351 = vector.shape_cast %350 : vector<1x16x120xf32> to vector<16x120xf32>
    %cst_188 = arith.constant 0.000000e+00 : f32
    %352 = vector.broadcast %cst_188 : f32 to vector<16x120xf32>
    %353 = arith.select %349, %351, %352 : vector<16x120xi1>, vector<16x120xf32>
    %354 = arith.addf %347, %353 : vector<16x120xf32>
    %c17_i32_189 = arith.constant 17 : i32
    %355 = vector.broadcast %c17_i32_189 : i32 to vector<16x120xi32>
    %356 = arith.cmpi eq, %234, %355 : vector<16x120xi32>
    %c17_190 = arith.constant 17 : index
    %c0_191 = arith.constant 0 : index
    %c0_192 = arith.constant 0 : index
    %357 = vector.load %arg2[%c17_190, %c0_191, %c0_192] : memref<32x16x120xf32, #tpu.memory_space<vmem>>, vector<1x16x120xf32>
    %358 = vector.shape_cast %357 : vector<1x16x120xf32> to vector<16x120xf32>
    %cst_193 = arith.constant 0.000000e+00 : f32
    %359 = vector.broadcast %cst_193 : f32 to vector<16x120xf32>
    %360 = arith.select %356, %358, %359 : vector<16x120xi1>, vector<16x120xf32>
    %361 = arith.addf %354, %360 : vector<16x120xf32>
    %c18_i32_194 = arith.constant 18 : i32
    %362 = vector.broadcast %c18_i32_194 : i32 to vector<16x120xi32>
    %363 = arith.cmpi eq, %234, %362 : vector<16x120xi32>
    %c18_195 = arith.constant 18 : index
    %c0_196 = arith.constant 0 : index
    %c0_197 = arith.constant 0 : index
    %364 = vector.load %arg2[%c18_195, %c0_196, %c0_197] : memref<32x16x120xf32, #tpu.memory_space<vmem>>, vector<1x16x120xf32>
    %365 = vector.shape_cast %364 : vector<1x16x120xf32> to vector<16x120xf32>
    %cst_198 = arith.constant 0.000000e+00 : f32
    %366 = vector.broadcast %cst_198 : f32 to vector<16x120xf32>
    %367 = arith.select %363, %365, %366 : vector<16x120xi1>, vector<16x120xf32>
    %368 = arith.addf %361, %367 : vector<16x120xf32>
    %c19_i32_199 = arith.constant 19 : i32
    %369 = vector.broadcast %c19_i32_199 : i32 to vector<16x120xi32>
    %370 = arith.cmpi eq, %234, %369 : vector<16x120xi32>
    %c19_200 = arith.constant 19 : index
    %c0_201 = arith.constant 0 : index
    %c0_202 = arith.constant 0 : index
    %371 = vector.load %arg2[%c19_200, %c0_201, %c0_202] : memref<32x16x120xf32, #tpu.memory_space<vmem>>, vector<1x16x120xf32>
    %372 = vector.shape_cast %371 : vector<1x16x120xf32> to vector<16x120xf32>
    %cst_203 = arith.constant 0.000000e+00 : f32
    %373 = vector.broadcast %cst_203 : f32 to vector<16x120xf32>
    %374 = arith.select %370, %372, %373 : vector<16x120xi1>, vector<16x120xf32>
    %375 = arith.addf %368, %374 : vector<16x120xf32>
    %c20_i32_204 = arith.constant 20 : i32
    %376 = vector.broadcast %c20_i32_204 : i32 to vector<16x120xi32>
    %377 = arith.cmpi eq, %234, %376 : vector<16x120xi32>
    %c20_205 = arith.constant 20 : index
    %c0_206 = arith.constant 0 : index
    %c0_207 = arith.constant 0 : index
    %378 = vector.load %arg2[%c20_205, %c0_206, %c0_207] : memref<32x16x120xf32, #tpu.memory_space<vmem>>, vector<1x16x120xf32>
    %379 = vector.shape_cast %378 : vector<1x16x120xf32> to vector<16x120xf32>
    %cst_208 = arith.constant 0.000000e+00 : f32
    %380 = vector.broadcast %cst_208 : f32 to vector<16x120xf32>
    %381 = arith.select %377, %379, %380 : vector<16x120xi1>, vector<16x120xf32>
    %382 = arith.addf %375, %381 : vector<16x120xf32>
    %c21_i32_209 = arith.constant 21 : i32
    %383 = vector.broadcast %c21_i32_209 : i32 to vector<16x120xi32>
    %384 = arith.cmpi eq, %234, %383 : vector<16x120xi32>
    %c21_210 = arith.constant 21 : index
    %c0_211 = arith.constant 0 : index
    %c0_212 = arith.constant 0 : index
    %385 = vector.load %arg2[%c21_210, %c0_211, %c0_212] : memref<32x16x120xf32, #tpu.memory_space<vmem>>, vector<1x16x120xf32>
    %386 = vector.shape_cast %385 : vector<1x16x120xf32> to vector<16x120xf32>
    %cst_213 = arith.constant 0.000000e+00 : f32
    %387 = vector.broadcast %cst_213 : f32 to vector<16x120xf32>
    %388 = arith.select %384, %386, %387 : vector<16x120xi1>, vector<16x120xf32>
    %389 = arith.addf %382, %388 : vector<16x120xf32>
    %c22_i32_214 = arith.constant 22 : i32
    %390 = vector.broadcast %c22_i32_214 : i32 to vector<16x120xi32>
    %391 = arith.cmpi eq, %234, %390 : vector<16x120xi32>
    %c22_215 = arith.constant 22 : index
    %c0_216 = arith.constant 0 : index
    %c0_217 = arith.constant 0 : index
    %392 = vector.load %arg2[%c22_215, %c0_216, %c0_217] : memref<32x16x120xf32, #tpu.memory_space<vmem>>, vector<1x16x120xf32>
    %393 = vector.shape_cast %392 : vector<1x16x120xf32> to vector<16x120xf32>
    %cst_218 = arith.constant 0.000000e+00 : f32
    %394 = vector.broadcast %cst_218 : f32 to vector<16x120xf32>
    %395 = arith.select %391, %393, %394 : vector<16x120xi1>, vector<16x120xf32>
    %396 = arith.addf %389, %395 : vector<16x120xf32>
    %c23_i32_219 = arith.constant 23 : i32
    %397 = vector.broadcast %c23_i32_219 : i32 to vector<16x120xi32>
    %398 = arith.cmpi eq, %234, %397 : vector<16x120xi32>
    %c23_220 = arith.constant 23 : index
    %c0_221 = arith.constant 0 : index
    %c0_222 = arith.constant 0 : index
    %399 = vector.load %arg2[%c23_220, %c0_221, %c0_222] : memref<32x16x120xf32, #tpu.memory_space<vmem>>, vector<1x16x120xf32>
    %400 = vector.shape_cast %399 : vector<1x16x120xf32> to vector<16x120xf32>
    %cst_223 = arith.constant 0.000000e+00 : f32
    %401 = vector.broadcast %cst_223 : f32 to vector<16x120xf32>
    %402 = arith.select %398, %400, %401 : vector<16x120xi1>, vector<16x120xf32>
    %403 = arith.addf %396, %402 : vector<16x120xf32>
    %c24_i32_224 = arith.constant 24 : i32
    %404 = vector.broadcast %c24_i32_224 : i32 to vector<16x120xi32>
    %405 = arith.cmpi eq, %234, %404 : vector<16x120xi32>
    %c24_225 = arith.constant 24 : index
    %c0_226 = arith.constant 0 : index
    %c0_227 = arith.constant 0 : index
    %406 = vector.load %arg2[%c24_225, %c0_226, %c0_227] : memref<32x16x120xf32, #tpu.memory_space<vmem>>, vector<1x16x120xf32>
    %407 = vector.shape_cast %406 : vector<1x16x120xf32> to vector<16x120xf32>
    %cst_228 = arith.constant 0.000000e+00 : f32
    %408 = vector.broadcast %cst_228 : f32 to vector<16x120xf32>
    %409 = arith.select %405, %407, %408 : vector<16x120xi1>, vector<16x120xf32>
    %410 = arith.addf %403, %409 : vector<16x120xf32>
    %c25_i32_229 = arith.constant 25 : i32
    %411 = vector.broadcast %c25_i32_229 : i32 to vector<16x120xi32>
    %412 = arith.cmpi eq, %234, %411 : vector<16x120xi32>
    %c25_230 = arith.constant 25 : index
    %c0_231 = arith.constant 0 : index
    %c0_232 = arith.constant 0 : index
    %413 = vector.load %arg2[%c25_230, %c0_231, %c0_232] : memref<32x16x120xf32, #tpu.memory_space<vmem>>, vector<1x16x120xf32>
    %414 = vector.shape_cast %413 : vector<1x16x120xf32> to vector<16x120xf32>
    %cst_233 = arith.constant 0.000000e+00 : f32
    %415 = vector.broadcast %cst_233 : f32 to vector<16x120xf32>
    %416 = arith.select %412, %414, %415 : vector<16x120xi1>, vector<16x120xf32>
    %417 = arith.addf %410, %416 : vector<16x120xf32>
    %c26_i32_234 = arith.constant 26 : i32
    %418 = vector.broadcast %c26_i32_234 : i32 to vector<16x120xi32>
    %419 = arith.cmpi eq, %234, %418 : vector<16x120xi32>
    %c26_235 = arith.constant 26 : index
    %c0_236 = arith.constant 0 : index
    %c0_237 = arith.constant 0 : index
    %420 = vector.load %arg2[%c26_235, %c0_236, %c0_237] : memref<32x16x120xf32, #tpu.memory_space<vmem>>, vector<1x16x120xf32>
    %421 = vector.shape_cast %420 : vector<1x16x120xf32> to vector<16x120xf32>
    %cst_238 = arith.constant 0.000000e+00 : f32
    %422 = vector.broadcast %cst_238 : f32 to vector<16x120xf32>
    %423 = arith.select %419, %421, %422 : vector<16x120xi1>, vector<16x120xf32>
    %424 = arith.addf %417, %423 : vector<16x120xf32>
    %c27_i32_239 = arith.constant 27 : i32
    %425 = vector.broadcast %c27_i32_239 : i32 to vector<16x120xi32>
    %426 = arith.cmpi eq, %234, %425 : vector<16x120xi32>
    %c27_240 = arith.constant 27 : index
    %c0_241 = arith.constant 0 : index
    %c0_242 = arith.constant 0 : index
    %427 = vector.load %arg2[%c27_240, %c0_241, %c0_242] : memref<32x16x120xf32, #tpu.memory_space<vmem>>, vector<1x16x120xf32>
    %428 = vector.shape_cast %427 : vector<1x16x120xf32> to vector<16x120xf32>
    %cst_243 = arith.constant 0.000000e+00 : f32
    %429 = vector.broadcast %cst_243 : f32 to vector<16x120xf32>
    %430 = arith.select %426, %428, %429 : vector<16x120xi1>, vector<16x120xf32>
    %431 = arith.addf %424, %430 : vector<16x120xf32>
    %c28_i32_244 = arith.constant 28 : i32
    %432 = vector.broadcast %c28_i32_244 : i32 to vector<16x120xi32>
    %433 = arith.cmpi eq, %234, %432 : vector<16x120xi32>
    %c28_245 = arith.constant 28 : index
    %c0_246 = arith.constant 0 : index
    %c0_247 = arith.constant 0 : index
    %434 = vector.load %arg2[%c28_245, %c0_246, %c0_247] : memref<32x16x120xf32, #tpu.memory_space<vmem>>, vector<1x16x120xf32>
    %435 = vector.shape_cast %434 : vector<1x16x120xf32> to vector<16x120xf32>
    %cst_248 = arith.constant 0.000000e+00 : f32
    %436 = vector.broadcast %cst_248 : f32 to vector<16x120xf32>
    %437 = arith.select %433, %435, %436 : vector<16x120xi1>, vector<16x120xf32>
    %438 = arith.addf %431, %437 : vector<16x120xf32>
    %c29_i32_249 = arith.constant 29 : i32
    %439 = vector.broadcast %c29_i32_249 : i32 to vector<16x120xi32>
    %440 = arith.cmpi eq, %234, %439 : vector<16x120xi32>
    %c29_250 = arith.constant 29 : index
    %c0_251 = arith.constant 0 : index
    %c0_252 = arith.constant 0 : index
    %441 = vector.load %arg2[%c29_250, %c0_251, %c0_252] : memref<32x16x120xf32, #tpu.memory_space<vmem>>, vector<1x16x120xf32>
    %442 = vector.shape_cast %441 : vector<1x16x120xf32> to vector<16x120xf32>
    %cst_253 = arith.constant 0.000000e+00 : f32
    %443 = vector.broadcast %cst_253 : f32 to vector<16x120xf32>
    %444 = arith.select %440, %442, %443 : vector<16x120xi1>, vector<16x120xf32>
    %445 = arith.addf %438, %444 : vector<16x120xf32>
    %c30_i32_254 = arith.constant 30 : i32
    %446 = vector.broadcast %c30_i32_254 : i32 to vector<16x120xi32>
    %447 = arith.cmpi eq, %234, %446 : vector<16x120xi32>
    %c30_255 = arith.constant 30 : index
    %c0_256 = arith.constant 0 : index
    %c0_257 = arith.constant 0 : index
    %448 = vector.load %arg2[%c30_255, %c0_256, %c0_257] : memref<32x16x120xf32, #tpu.memory_space<vmem>>, vector<1x16x120xf32>
    %449 = vector.shape_cast %448 : vector<1x16x120xf32> to vector<16x120xf32>
    %cst_258 = arith.constant 0.000000e+00 : f32
    %450 = vector.broadcast %cst_258 : f32 to vector<16x120xf32>
    %451 = arith.select %447, %449, %450 : vector<16x120xi1>, vector<16x120xf32>
    %452 = arith.addf %445, %451 : vector<16x120xf32>
    %c31_i32_259 = arith.constant 31 : i32
    %453 = vector.broadcast %c31_i32_259 : i32 to vector<16x120xi32>
    %454 = arith.cmpi eq, %234, %453 : vector<16x120xi32>
    %c31_260 = arith.constant 31 : index
    %c0_261 = arith.constant 0 : index
    %c0_262 = arith.constant 0 : index
    %455 = vector.load %arg2[%c31_260, %c0_261, %c0_262] : memref<32x16x120xf32, #tpu.memory_space<vmem>>, vector<1x16x120xf32>
    %456 = vector.shape_cast %455 : vector<1x16x120xf32> to vector<16x120xf32>
    %cst_263 = arith.constant 0.000000e+00 : f32
    %457 = vector.broadcast %cst_263 : f32 to vector<16x120xf32>
    %458 = arith.select %454, %456, %457 : vector<16x120xi1>, vector<16x120xf32>
    %459 = arith.addf %452, %458 : vector<16x120xf32>
    %460 = vector.extract_strided_slice %459 {offsets = [0, 0], sizes = [16, 119], strides = [1, 1]} : vector<16x120xf32> to vector<16x119xf32>
    %461 = tpu.concatenate %0, %460 in 1 : vector<16x1xf32>, vector<16x119xf32> -> vector<16x120xf32>
    %462 = vector.extract_strided_slice %459 {offsets = [0, 1], sizes = [16, 119], strides = [1, 1]} : vector<16x120xf32> to vector<16x119xf32>
    %463 = tpu.concatenate %462, %0 in 1 : vector<16x119xf32>, vector<16x1xf32> -> vector<16x120xf32>
    %464 = tpu.concatenate %461, %459, %463 in 0 : vector<16x120xf32>, vector<16x120xf32>, vector<16x120xf32> -> vector<48x120xf32>
    %465 = tpu.concatenate %232, %464 in 1 : vector<48x120xf32>, vector<48x120xf32> -> vector<48x240xf32>
    %c0_264 = arith.constant 0 : index
    %c0_265 = arith.constant 0 : index
    %466 = vector.load %arg3[%c0_264, %c0_265] : memref<32x48xf32, #tpu.memory_space<vmem>>, vector<32x48xf32>
    %cst_266 = arith.constant dense<0.000000e+00> : vector<32x240xf32>
    %467 = tpu.matmul %466, %465, %cst_266 {dimension_numbers = #tpu.dot_dimension_numbers<[1], [0], [0], [1], [0, 0, 1, 1], [], []>} : vector<32x48xf32>, vector<48x240xf32>, vector<32x240xf32> -> vector<32x240xf32>
    %c0_267 = arith.constant 0 : index
    %c0_268 = arith.constant 0 : index
    %468 = vector.load %arg4[%c0_267, %c0_268] : memref<32x1xf32, #tpu.memory_space<vmem>>, vector<32x1xf32>
    %469 = vector.broadcast %468 : vector<32x1xf32> to vector<32x240xf32>
    %470 = arith.addf %467, %469 : vector<32x240xf32>
    %cst_269 = arith.constant 0.000000e+00 : f32
    %471 = vector.broadcast %cst_269 : f32 to vector<32x240xf32>
    %472 = arith.maximumf %470, %471 : vector<32x240xf32>
    %473 = vector.extract_strided_slice %472 {offsets = [0, 0], sizes = [32, 120], strides = [1, 1]} : vector<32x240xf32> to vector<32x120xf32>
    %cst_270 = arith.constant dense<0xFF800000> : vector<32xf32>
    %474 = vector.multi_reduction <maximumf>, %473, %cst_270 [1] : vector<32x120xf32> to vector<32xf32>
    %475 = vector.shape_cast %474 : vector<32xf32> to vector<32x1xf32>
    %476 = vector.extract_strided_slice %472 {offsets = [0, 120], sizes = [32, 120], strides = [1, 1]} : vector<32x240xf32> to vector<32x120xf32>
    %cst_271 = arith.constant dense<0xFF800000> : vector<32xf32>
    %477 = vector.multi_reduction <maximumf>, %476, %cst_271 [1] : vector<32x120xf32> to vector<32xf32>
    %478 = vector.shape_cast %477 : vector<32xf32> to vector<32x1xf32>
    %479 = tpu.concatenate %475, %478 in 1 : vector<32x1xf32>, vector<32x1xf32> -> vector<32x2xf32>
    %480 = vector.extract_strided_slice %479 {offsets = [0, 0], sizes = [32, 1], strides = [1, 1]} : vector<32x2xf32> to vector<32x1xf32>
    %c0_272 = arith.constant 0 : index
    %c0_273 = arith.constant 0 : index
    %481 = vector.load %arg5[%c0_272, %c0_273] : memref<32x4xf32, #tpu.memory_space<vmem>>, vector<32x4xf32>
    %482 = vector.broadcast %480 : vector<32x1xf32> to vector<32x4xf32>
    %483 = arith.mulf %482, %481 : vector<32x4xf32>
    %cst_274 = arith.constant dense<0.000000e+00> : vector<4xf32>
    %484 = vector.multi_reduction <add>, %483, %cst_274 [0] : vector<32x4xf32> to vector<4xf32>
    %485 = vector.shape_cast %484 : vector<4xf32> to vector<1x4xf32>
    %486 = vector.extract_strided_slice %479 {offsets = [0, 1], sizes = [32, 1], strides = [1, 1]} : vector<32x2xf32> to vector<32x1xf32>
    %c0_275 = arith.constant 0 : index
    %c0_276 = arith.constant 0 : index
    %487 = vector.load %arg5[%c0_275, %c0_276] : memref<32x4xf32, #tpu.memory_space<vmem>>, vector<32x4xf32>
    %488 = vector.broadcast %486 : vector<32x1xf32> to vector<32x4xf32>
    %489 = arith.mulf %488, %487 : vector<32x4xf32>
    %cst_277 = arith.constant dense<0.000000e+00> : vector<4xf32>
    %490 = vector.multi_reduction <add>, %489, %cst_277 [0] : vector<32x4xf32> to vector<4xf32>
    %491 = vector.shape_cast %490 : vector<4xf32> to vector<1x4xf32>
    %492 = tpu.concatenate %485, %491 in 0 : vector<1x4xf32>, vector<1x4xf32> -> vector<2x4xf32>
    %c0_278 = arith.constant 0 : index
    %c0_279 = arith.constant 0 : index
    %493 = vector.load %arg6[%c0_278, %c0_279] : memref<1x4xf32, #tpu.memory_space<vmem>>, vector<1x4xf32>
    %494 = vector.broadcast %493 : vector<1x4xf32> to vector<2x4xf32>
    %495 = arith.addf %492, %494 : vector<2x4xf32>
    %cst_280 = arith.constant dense<0xFF800000> : vector<2xf32>
    %496 = vector.multi_reduction <maximumf>, %495, %cst_280 [1] : vector<2x4xf32> to vector<2xf32>
    %497 = vector.shape_cast %496 : vector<2xf32> to vector<2x1xf32>
    %498 = vector.broadcast %497 : vector<2x1xf32> to vector<2x4xf32>
    %499 = arith.subf %495, %498 : vector<2x4xf32>
    %500 = math.exp %499 : vector<2x4xf32>
    %cst_281 = arith.constant dense<0.000000e+00> : vector<2xf32>
    %501 = vector.multi_reduction <add>, %500, %cst_281 [1] : vector<2x4xf32> to vector<2xf32>
    %502 = vector.shape_cast %501 : vector<2xf32> to vector<2x1xf32>
    %503 = vector.broadcast %502 : vector<2x1xf32> to vector<2x4xf32>
    %504 = arith.divf %500, %503 : vector<2x4xf32>
    %c0_282 = arith.constant 0 : index
    %c0_283 = arith.constant 0 : index
    %505 = vector.load %arg7[%c0_282, %c0_283] : memref<2x4xf32, #tpu.memory_space<vmem>>, vector<2x4xf32>
    tpu.vector_store %arg7[%c0_282, %c0_283], %504 {strides = array<i32>} : memref<2x4xf32, #tpu.memory_space<vmem>>, vector<2x4xf32>,
    return
  }
  func.func @transform_0(%arg0: i32) -> (i32, i32, i32) {
    %c0_i32 = arith.constant 0 : i32
    %c0_i32_0 = arith.constant 0 : i32
    %c0_i32_1 = arith.constant 0 : i32
    %c0_i32_2 = arith.constant 0 : i32
    return %c0_i32, %c0_i32_0, %c0_i32_1 : i32, i32, i32
  }
  func.func @transform_1(%arg0: i32) -> (i32, i32, i32) {
    %c0_i32 = arith.constant 0 : i32
    %c0_i32_0 = arith.constant 0 : i32
    %c0_i32_1 = arith.constant 0 : i32
    %c0_i32_2 = arith.constant 0 : i32
    return %c0_i32, %c0_i32_0, %c0_i32_1 : i32, i32, i32
  }
  func.func @transform_2(%arg0: i32) -> (i32, i32) {
    %c0_i32 = arith.constant 0 : i32
    %c0_i32_0 = arith.constant 0 : i32
    %c0_i32_1 = arith.constant 0 : i32
    return %c0_i32, %c0_i32_0 : i32, i32
  }
  func.func @transform_3(%arg0: i32) -> (i32, i32) {
    %c0_i32 = arith.constant 0 : i32
    %c0_i32_0 = arith.constant 0 : i32
    %c0_i32_1 = arith.constant 0 : i32
    return %c0_i32, %c0_i32_0 : i32, i32
  }
  func.func @transform_4(%arg0: i32) -> (i32, i32) {
    %c0_i32 = arith.constant 0 : i32
    %c0_i32_0 = arith.constant 0 : i32
    %c0_i32_1 = arith.constant 0 : i32
    return %c0_i32, %c0_i32_0 : i32, i32
  }
  func.func @transform_5(%arg0: i32) -> (i32, i32) {
    %c0_i32 = arith.constant 0 : i32
    %c0_i32_0 = arith.constant 0 : i32
    %c0_i32_1 = arith.constant 0 : i32
    return %c0_i32, %c0_i32_0 : i32, i32
  }
  func.func @transform_6(%arg0: i32) -> (i32, i32) {
    %c0_i32 = arith.constant 0 : i32
    %c0_i32_0 = arith.constant 0 : i32
    %c0_i32_1 = arith.constant 0 : i32
    return %c0_i32, %c0_i32_0 : i32, i32
  }
}

</mosaic_0001>

<bundles_post_ra>
// kernel: cnn_forward.1
= control target key start
LH: loop header
LB: loop body
LE: loop exit
PB: predicated region body
PF: predicated region fallthrough
CT: control target
= control target key end

     0   :  { %s1854_s0 = inlined_call_operand.vmem [shape: s32[2,16,120], index: 0, kind: input, shape index: {}]   ;;  %s1855_s1 = inlined_call_operand.vmem [shape: f32[32,16,120], index: 1, kind: input, shape index: {}]   ;;  %s1856_s2 = inlined_call_operand.vmem [shape: f32[32,48], index: 2, kind: input, shape index: {}]   ;;  %s1857_s3 = inlined_call_operand.vmem [shape: f32[32,1], index: 3, kind: input, shape index: {}]   ;;  %s1858_s4 = inlined_call_operand.vmem [shape: f32[32,4], index: 4, kind: input, shape index: {}]   ;;  %s1859_s5 = inlined_call_operand.vmem [shape: f32[1,4], index: 5, kind: input, shape index: {}]   ;;  %s1860_s6 = inlined_call_operand.hbm [shape: f32[2,4], index: 6, kind: output, shape index: {}]  }
   0x1   :  { %v1069_v0 = vld [vmem:[%s1855_s1] sm:$0xff]  ;;  %v1074_v1 = vld [vmem:[%s1855_s1 + $0x8] sm:$0xff]  ;;  %v1079_v2 = vld [vmem:[%s1855_s1 + $0x10] sm:$0xff] }
   0x2   :  { %v1084_v3 = vld [vmem:[%s1855_s1 + $0x18] sm:$0xff]  ;;  %v1089_v4 = vld [vmem:[%s1855_s1 + $0x20] sm:$0xff]  ;;  %v1094_v5 = vld [vmem:[%s1855_s1 + $0x28] sm:$0xff] }
   0x3   :  { %v1099_v6 = vld [vmem:[%s1854_s0 + $0x10] sm:$0xff]  ;;  %v1104_v7 = vld [vmem:[%s1854_s0 + $0x18] sm:$0xff] }
   0x4   :  { %v1109_v8 = vld [vmem:[%s1855_s1 + $0x30] sm:$0xff]  ;;  %v1114_v9 = vld [vmem:[%s1855_s1 + $0x38] sm:$0xff]  ;;  %vm336_vm0 = vcmp.eq.s32.totalorder %v1099_v6, 0  ;;  %vm337_vm1 = vcmp.eq.s32.totalorder %v1104_v7, 0  ;;  %vm342_vm2 = vcmp.eq.s32.totalorder %v1099_v6, 1  ;;  %vm343_vm3 = vcmp.eq.s32.totalorder %v1104_v7, 1 }
   0x5   :  { %v338_v10 = vsel %vm336_vm0, %v1069_v0, 0.0  ;;  %v339_v11 = vsel %vm337_vm1, %v1074_v1, 0.0  ;;  %v344_v12 = vsel %vm342_vm2, %v1079_v2, 0.0  ;;  %v345_v13 = vsel %vm343_vm3, %v1084_v3, 0.0 }
   0x6   :  { %11 = vsyncpa [#allocation3], 0  ;;  %v346_v14 = vadd.f32 %v344_v12, %v338_v10  ;;  %v347_v15 = vadd.f32 %v345_v13, %v339_v11  ;;  %vm348_vm4 = vcmp.eq.s32.totalorder %v1099_v6, 2  ;;  %vm349_vm5 = vcmp.eq.s32.totalorder %v1104_v7, 2  ;;  %v1129_v16 = vld [vmem:[%s1855_s1 + $0x40] sm:$0xff]  ;;  %v1134_v17 = vld [vmem:[%s1855_s1 + $0x48] sm:$0xff] }
   0x7   :  { %v350_v18 = vsel %vm348_vm4, %v1089_v4, 0.0  ;;  %v351_v19 = vsel %vm349_vm5, %v1094_v5, 0.0  ;;  %vm354_vm6 = vcmp.eq.s32.totalorder %v1099_v6, 3  ;;  %vm355_vm7 = vcmp.eq.s32.totalorder %v1104_v7, 3  ;;  %v1143_v20 = vld [vmem:[%s1855_s1 + $0x50] sm:$0xff]  ;;  %v1148_v21 = vld [vmem:[%s1855_s1 + $0x58] sm:$0xff] }
   0x8   :  { %v352_v22 = vadd.f32 %v350_v18, %v346_v14  ;;  %v353_v23 = vadd.f32 %v351_v19, %v347_v15  ;;  %v356_v24 = vsel %vm354_vm6, %v1109_v8, 0.0  ;;  %v357_v25 = vsel %vm355_vm7, %v1114_v9, 0.0  ;;  %v1155_v26 = vld [vmem:[%s1855_s1 + $0x60] sm:$0xff]  ;;  %v1160_v27 = vld [vmem:[%s1855_s1 + $0x68] sm:$0xff]  ;;  %v1171_v32 = vld [vmem:[%s1855_s1 + $0x70] sm:$0xff]  ;;  %s1026_s13 = smov 120  }
   0x9   :  { %vm360_vm8 = vcmp.eq.s32.totalorder %v1099_v6, 4  ;;  %vm361_vm9 = vcmp.eq.s32.totalorder %v1104_v7, 4  ;;  %vm366_vm10 = vcmp.eq.s32.totalorder %v1099_v6, 5  ;;  %vm367_vm11 = vcmp.eq.s32.totalorder %v1104_v7, 5  ;;  %v1176_v33 = vld [vmem:[%s1855_s1 + $0x78] sm:$0xff]  ;;  %v1185_v36 = vld [vmem:[%s1855_s1 + $0x80] sm:$0xff] }
   0xa   :  { %v358_v28 = vadd.f32 %v356_v24, %v352_v22  ;;  %v359_v29 = vadd.f32 %v357_v25, %v353_v23  ;;  %v362_v30 = vsel %vm360_vm8, %v1129_v16, 0.0  ;;  %v363_v31 = vsel %vm361_vm9, %v1134_v17, 0.0  ;;  %v1190_v37 = vld [vmem:[%s1855_s1 + $0x88] sm:$0xff]  ;;  %v1197_v42 = vld [vmem:[%s1855_s1 + $0x90] sm:$0xff]  ;;  %v1202_v43 = vld [vmem:[%s1855_s1 + $0x98] sm:$0xff] }
   0xb   :  { %v368_v34 = vsel %vm366_vm10, %v1143_v20, 0.0  ;;  %v369_v35 = vsel %vm367_vm11, %v1148_v21, 0.0  ;;  %vm372_vm12 = vcmp.eq.s32.totalorder %v1099_v6, 6  ;;  %vm373_vm13 = vcmp.eq.s32.totalorder %v1104_v7, 6  ;;  %v1213_v48 = vld [vmem:[%s1855_s1 + $0xa0] sm:$0xff]  ;;  %v1218_v49 = vld [vmem:[%s1855_s1 + $0xa8] sm:$0xff] }
   0xc   :  { %v364_v38 = vadd.f32 %v362_v30, %v358_v28  ;;  %v365_v39 = vadd.f32 %v363_v31, %v359_v29  ;;  %v374_v40 = vsel %vm372_vm12, %v1155_v26, 0.0  ;;  %v375_v41 = vsel %vm373_vm13, %v1160_v27, 0.0  ;;  %v1227_v52 = vld [vmem:[%s1855_s1 + $0xb0] sm:$0xff]  ;;  %v1232_v53 = vld [vmem:[%s1855_s1 + $0xb8] sm:$0xff]  ;;  %v1239_v58 = vld [vmem:[%s1855_s1 + $0xc0] sm:$0xff] }
   0xd   :  { %vm378_vm14 = vcmp.eq.s32.totalorder %v1099_v6, 7  ;;  %vm379_vm15 = vcmp.eq.s32.totalorder %v1104_v7, 7  ;;  %vm384_vm0 = vcmp.eq.s32.totalorder %v1099_v6, 8  ;;  %vm385_vm1 = vcmp.eq.s32.totalorder %v1104_v7, 8  ;;  %v1244_v59 = vld [vmem:[%s1855_s1 + $0xc8] sm:$0xff]  ;;  %v1255_v10 = vld [vmem:[%s1855_s1 + $0xd0] sm:$0xff] }
   0xe   :  { %v370_v44 = vadd.f32 %v368_v34, %v364_v38  ;;  %v371_v45 = vadd.f32 %v369_v35, %v365_v39  ;;  %v380_v46 = vsel %vm378_vm14, %v1171_v32, 0.0  ;;  %v381_v47 = vsel %vm379_vm15, %v1176_v33, 0.0  ;;  %v1260_v11 = vld [vmem:[%s1855_s1 + $0xd8] sm:$0xff]  ;;  %v1269_v14 = vld [vmem:[%s1855_s1 + $0xe0] sm:$0xff]  ;;  %v1274_v15 = vld [vmem:[%s1855_s1 + $0xe8] sm:$0xff] }
   0xf   :  { %v386_v50 = vsel %vm384_vm0, %v1185_v36, 0.0  ;;  %v387_v51 = vsel %vm385_vm1, %v1190_v37, 0.0  ;;  %vm390_vm2 = vcmp.eq.s32.totalorder %v1099_v6, 9  ;;  %vm391_vm3 = vcmp.eq.s32.totalorder %v1104_v7, 9  ;;  %1894 = vst [vmem:[#allocation5_spill] sm:$0xff] %v1269_v14  ;;  %1895 = vst [vmem:[#allocation6_spill] sm:$0xff] %v1274_v15 }
  0x10   :  { %v376_v54 = vadd.f32 %v374_v40, %v370_v44  ;;  %v377_v55 = vadd.f32 %v375_v41, %v371_v45  ;;  %v392_v56 = vsel %vm390_vm2, %v1197_v42, 0.0  ;;  %v393_v57 = vsel %vm391_vm3, %v1202_v43, 0.0  ;;  %v1281_v24 = vld [vmem:[%s1855_s1 + $0xf0] sm:$0xff]  ;;  %v1286_v25 = vld [vmem:[%s1855_s1 + $0xf8] sm:$0xff]  ;;  %v1297_v34 = vld [vmem:[%s1855_s1 + $0x100] sm:$0xff] }
  0x11   :  { %vm396_vm4 = vcmp.eq.s32.totalorder %v1099_v6, 10  ;;  %vm397_vm5 = vcmp.eq.s32.totalorder %v1104_v7, 10  ;;  %vm402_vm6 = vcmp.eq.s32.totalorder %v1099_v6, 11  ;;  %vm403_vm7 = vcmp.eq.s32.totalorder %v1104_v7, 11  ;;  %1896 = vst [vmem:[#allocation7_spill] sm:$0xff] %v1281_v24  ;;  %1897 = vst [vmem:[#allocation8_spill] sm:$0xff] %v1286_v25 }
  0x12   :  { %v382_v60 = vadd.f32 %v380_v46, %v376_v54  ;;  %v383_v61 = vadd.f32 %v381_v47, %v377_v55  ;;  %v398_v62 = vsel %vm396_vm4, %v1213_v48, 0.0  ;;  %v399_v63 = vsel %vm397_vm5, %v1218_v49, 0.0  ;;  %1898 = vst [vmem:[#allocation9_spill] sm:$0xff] %v1297_v34  ;;  %v1302_v35 = vld [vmem:[%s1855_s1 + $0x108] sm:$0xff]  ;;  %v1311_v40 = vld [vmem:[%s1855_s1 + $0x110] sm:$0xff]  ;;  %v1316_v41 = vld [vmem:[%s1855_s1 + $0x118] sm:$0xff] }
  0x13   :  { %v404_v12 = vsel %vm402_vm6, %v1227_v52, 0.0  ;;  %v405_v13 = vsel %vm403_vm7, %v1232_v53, 0.0  ;;  %vm408_vm8 = vcmp.eq.s32.totalorder %v1099_v6, 12  ;;  %vm409_vm9 = vcmp.eq.s32.totalorder %v1104_v7, 12  ;;  %1899 = vst [vmem:[#allocation10_spill] sm:$0xff] %v1302_v35  ;;  %1900 = vst [vmem:[#allocation11_spill] sm:$0xff] %v1311_v40 }
  0x14   :  { %v388_v18 = vadd.f32 %v386_v50, %v382_v60  ;;  %v389_v19 = vadd.f32 %v387_v51, %v383_v61  ;;  %v410_v22 = vsel %vm408_vm8, %v1239_v58, 0.0  ;;  %v411_v23 = vsel %vm409_vm9, %v1244_v59, 0.0  ;;  %1901 = vst [vmem:[#allocation12_spill] sm:$0xff] %v1316_v41  ;;  %v1323_v50 = vld [vmem:[%s1855_s1 + $0x120] sm:$0xff]  ;;  %v1328_v51 = vld [vmem:[%s1855_s1 + $0x128] sm:$0xff]  ;;  %v1339_v60 = vld [vmem:[%s1855_s1 + $0x130] sm:$0xff] }
  0x15   :  { %vm414_vm10 = vcmp.eq.s32.totalorder %v1099_v6, 13  ;;  %vm415_vm11 = vcmp.eq.s32.totalorder %v1104_v7, 13  ;;  %vm420_vm12 = vcmp.eq.s32.totalorder %v1099_v6, 14  ;;  %vm421_vm13 = vcmp.eq.s32.totalorder %v1104_v7, 14  ;;  %1902 = vst [vmem:[#allocation13_spill] sm:$0xff] %v1323_v50  ;;  %1903 = vst [vmem:[#allocation14_spill] sm:$0xff] %v1328_v51 }
  0x16   :  { %v394_v28 = vadd.f32 %v392_v56, %v388_v18  ;;  %v395_v29 = vadd.f32 %v393_v57, %v389_v19  ;;  %v416_v30 = vsel %vm414_vm10, %v1255_v10, 0.0  ;;  %v417_v31 = vsel %vm415_vm11, %v1260_v11, 0.0  ;;  %1904 = vst [vmem:[#allocation15_spill] sm:$0xff] %v1339_v60  ;;  %v1344_v61 = vld [vmem:[%s1855_s1 + $0x138] sm:$0xff] }
  0x17   :  { %v422_v38 = vsel %vm420_vm12, %v1269_v14, 0.0  ;;  %v423_v39 = vsel %vm421_vm13, %v1274_v15, 0.0  ;;  %vm426_vm14 = vcmp.eq.s32.totalorder %v1099_v6, 15  ;;  %vm427_vm15 = vcmp.eq.s32.totalorder %v1104_v7, 15  ;;  %1905 = vst [vmem:[#allocation16_spill] sm:$0xff] %v1344_v61 }
  0x18   :  { %v400_v44 = vadd.f32 %v398_v62, %v394_v28  ;;  %v401_v45 = vadd.f32 %v399_v63, %v395_v29  ;;  %v428_v46 = vsel %vm426_vm14, %v1281_v24, 0.0  ;;  %v429_v47 = vsel %vm427_vm15, %v1286_v25, 0.0  ;;  %v1538_v24 = vld [vmem:[%s1855_s1 + $0x1e8] sm:$0xff] }
  0x19   :  { %vm432_vm0 = vcmp.eq.s32.totalorder %v1099_v6, 16  ;;  %vm433_vm1 = vcmp.eq.s32.totalorder %v1104_v7, 16  ;;  %vm438_vm2 = vcmp.eq.s32.totalorder %v1099_v6, 17  ;;  %vm439_vm3 = vcmp.eq.s32.totalorder %v1104_v7, 17 }
  0x1a   :  { %v406_v54 = vadd.f32 %v404_v12, %v400_v44  ;;  %v407_v55 = vadd.f32 %v405_v13, %v401_v45  ;;  %v434_v56 = vsel %vm432_vm0, %v1297_v34, 0.0  ;;  %v435_v57 = vsel %vm433_vm1, %v1302_v35, 0.0  ;;  %v1353_v12 = vld [vmem:[%s1855_s1 + $0x140] sm:$0xff]  ;;  %v1358_v13 = vld [vmem:[%s1855_s1 + $0x148] sm:$0xff]  ;;  %v1369_v44 = vld [vmem:[%s1855_s1 + $0x150] sm:$0xff] }
  0x1b   :  { %v440_v62 = vsel %vm438_vm2, %v1311_v40, 0.0  ;;  %v441_v63 = vsel %vm439_vm3, %v1316_v41, 0.0  ;;  %vm444_vm4 = vcmp.eq.s32.totalorder %v1099_v6, 18  ;;  %vm445_vm5 = vcmp.eq.s32.totalorder %v1104_v7, 18  ;;  %1906 = vst [vmem:[#allocation17_spill] sm:$0xff] %v1353_v12  ;;  %1907 = vst [vmem:[#allocation18_spill] sm:$0xff] %v1358_v13 }
  0x1c   :  { %v412_v18 = vadd.f32 %v410_v22, %v406_v54  ;;  %v413_v19 = vadd.f32 %v411_v23, %v407_v55  ;;  %v1361_v28 = vsel %vm444_vm4, %v1323_v50, 0.0  ;;  %v1364_v29 = vsel %vm445_vm5, %v1328_v51, 0.0  ;;  %1908 = vst [vmem:[#allocation19_spill] sm:$0xff] %v1369_v44  ;;  %v1374_v45 = vld [vmem:[%s1855_s1 + $0x158] sm:$0xff]  ;;  %v1389_v51 = vld [vmem:[%s1855_s1 + $0x160] sm:$0xff]  ;;  %v1394_v50 = vld [vmem:[%s1855_s1 + $0x168] sm:$0xff] }
  0x1d   :  { %1909 = vst [vmem:[#allocation20_spill] sm:$0xff] %v1374_v45  ;;  %vm450_vm6 = vcmp.eq.s32.totalorder %v1099_v6, 19  ;;  %vm451_vm7 = vcmp.eq.s32.totalorder %v1104_v7, 19  ;;  %vm456_vm8 = vcmp.eq.s32.totalorder %v1099_v6, 20  ;;  %vm457_vm9 = vcmp.eq.s32.totalorder %v1104_v7, 20  ;;  %1910 = vst [vmem:[#allocation21_spill] sm:$0xff] %v1389_v51 }
  0x1e   :  { %v418_v22 = vadd.f32 %v416_v30, %v412_v18  ;;  %v419_v23 = vadd.f32 %v417_v31, %v413_v19  ;;  %v1381_v54 = vsel %vm450_vm6, %v1339_v60, 0.0  ;;  %v1384_v55 = vsel %vm451_vm7, %v1344_v61, 0.0  ;;  %1911 = vst [vmem:[#allocation22_spill] sm:$0xff] %v1394_v50  ;;  %v1407_v31 = vld [vmem:[%s1855_s1 + $0x170] sm:$0xff]  ;;  %v1412_v18 = vld [vmem:[%s1855_s1 + $0x178] sm:$0xff]  ;;  %v1423_v60 = vld [vmem:[%s1855_s1 + $0x180] sm:$0xff] }
  0x1f   :  { %v1397_v41 = vsel %vm456_vm8, %v1353_v12, 0.0  ;;  %v1400_v30 = vsel %vm457_vm9, %v1358_v13, 0.0  ;;  %vm462_vm10 = vcmp.eq.s32.totalorder %v1099_v6, 21  ;;  %vm463_vm11 = vcmp.eq.s32.totalorder %v1104_v7, 21  ;;  %1912 = vst [vmem:[#allocation23_spill] sm:$0xff] %v1407_v31  ;;  %1913 = vst [vmem:[#allocation24_spill] sm:$0xff] %v1412_v18 }
  0x20   :  { %v424_v19 = vadd.f32 %v422_v38, %v418_v22  ;;  %v425_v12 = vadd.f32 %v423_v39, %v419_v23  ;;  %v1415_v61 = vsel %vm462_vm10, %v1369_v44, 0.0  ;;  %v1418_v13 = vsel %vm463_vm11, %v1374_v45, 0.0  ;;  %1914 = vst [vmem:[#allocation25_spill] sm:$0xff] %v1423_v60  ;;  %v1428_v40 = vld [vmem:[%s1855_s1 + $0x188] sm:$0xff]  ;;  %v1443_v45 = vld [vmem:[%s1855_s1 + $0x190] sm:$0xff]  ;;  %v1448_v44 = vld [vmem:[%s1855_s1 + $0x198] sm:$0xff] }
  0x21   :  { %1915 = vst [vmem:[#allocation26_spill] sm:$0xff] %v1428_v40  ;;  %vm468_vm12 = vcmp.eq.s32.totalorder %v1099_v6, 22  ;;  %vm469_vm13 = vcmp.eq.s32.totalorder %v1104_v7, 22  ;;  %vm474_vm14 = vcmp.eq.s32.totalorder %v1099_v6, 23  ;;  %vm475_vm15 = vcmp.eq.s32.totalorder %v1104_v7, 23  ;;  %1916 = vst [vmem:[#allocation27_spill] sm:$0xff] %v1443_v45 }
  0x22   :  { %v430_v38 = vadd.f32 %v428_v46, %v424_v19  ;;  %v431_v39 = vadd.f32 %v429_v47, %v425_v12  ;;  %v1435_v22 = vsel %vm468_vm12, %v1389_v51, 0.0  ;;  %v1438_v23 = vsel %vm469_vm13, %v1394_v50, 0.0  ;;  %1917 = vst [vmem:[#allocation28_spill] sm:$0xff] %v1448_v44  ;;  %v1461_v47 = vld [vmem:[%s1855_s1 + $0x1a0] sm:$0xff]  ;;  %v1466_v12 = vld [vmem:[%s1855_s1 + $0x1a8] sm:$0xff]  ;;  %v1477_v51 = vld [vmem:[%s1855_s1 + $0x1b0] sm:$0xff] }
  0x23   :  { %v1451_v35 = vsel %vm474_vm14, %v1407_v31, 0.0  ;;  %v1454_v46 = vsel %vm475_vm15, %v1412_v18, 0.0  ;;  %vm480_vm0 = vcmp.eq.s32.totalorder %v1099_v6, 24  ;;  %vm481_vm1 = vcmp.eq.s32.totalorder %v1104_v7, 24  ;;  %1918 = vst [vmem:[#allocation29_spill] sm:$0xff] %v1461_v47  ;;  %1919 = vst [vmem:[#allocation30_spill] sm:$0xff] %v1466_v12 }
  0x24   :  { %v436_v19 = vadd.f32 %v434_v56, %v430_v38  ;;  %v437_v31 = vadd.f32 %v435_v57, %v431_v39  ;;  %v1469_v50 = vsel %vm480_vm0, %v1423_v60, 0.0  ;;  %v1472_v18 = vsel %vm481_vm1, %v1428_v40, 0.0  ;;  %1920 = vst [vmem:[#allocation31_spill] sm:$0xff] %v1477_v51  ;;  %v1482_v34 = vld [vmem:[%s1855_s1 + $0x1b8] sm:$0xff]  ;;  %v1497_v40 = vld [vmem:[%s1855_s1 + $0x1c0] sm:$0xff]  ;;  %v1502_v60 = vld [vmem:[%s1855_s1 + $0x1c8] sm:$0xff] }
  0x25   :  { %1921 = vst [vmem:[#allocation32_spill] sm:$0xff] %v1482_v34  ;;  %vm486_vm2 = vcmp.eq.s32.totalorder %v1099_v6, 25  ;;  %vm487_vm3 = vcmp.eq.s32.totalorder %v1104_v7, 25  ;;  %vm492_vm4 = vcmp.eq.s32.totalorder %v1099_v6, 26  ;;  %vm493_vm5 = vcmp.eq.s32.totalorder %v1104_v7, 26  ;;  %1922 = vst [vmem:[#allocation33_spill] sm:$0xff] %v1497_v40 }
  0x26   :  { %v442_v56 = vadd.f32 %v440_v62, %v436_v19  ;;  %v443_v57 = vadd.f32 %v441_v63, %v437_v31  ;;  %v1489_v38 = vsel %vm486_vm2, %v1443_v45, 0.0  ;;  %v1492_v39 = vsel %vm487_vm3, %v1448_v44, 0.0  ;;  %1923 = vst [vmem:[#allocation34_spill] sm:$0xff] %v1502_v60  ;;  %v1515_v63 = vld [vmem:[%s1855_s1 + $0x1d0] sm:$0xff]  ;;  %v1520_v31 = vld [vmem:[%s1855_s1 + $0x1d8] sm:$0xff]  ;;  %v1533_v45 = vld [vmem:[%s1855_s1 + $0x1e0] sm:$0xff] }
  0x27   :  { %v1505_v25 = vsel %vm492_vm4, %v1461_v47, 0.0  ;;  %v1508_v62 = vsel %vm493_vm5, %v1466_v12, 0.0  ;;  %vm498_vm6 = vcmp.eq.s32.totalorder %v1099_v6, 27  ;;  %vm499_vm7 = vcmp.eq.s32.totalorder %v1104_v7, 27  ;;  %1924 = vst [vmem:[#allocation35_spill] sm:$0xff] %v1520_v31 }
  0x28   :  { %v448_v19 = vadd.f32 %v1361_v28, %v442_v56  ;;  %v449_v47 = vadd.f32 %v1364_v29, %v443_v57  ;;  %v1525_v12 = vsel %vm498_vm6, %v1477_v51, 0.0  ;;  %v1528_v44 = vsel %vm499_vm7, %v1482_v34, 0.0  ;;  %v1555_v34 = vld [vmem:[%s1854_s0] sm:$0xff]  ;;  %v1560_v51 = vld [vmem:[%s1854_s0 + $0x8] sm:$0xff]  ;;  %s1024_s0 = smov 1  }
  0x29   :  { %vm504_vm8 = vcmp.eq.s32.totalorder %v1099_v6, 28  ;;  %vm505_vm9 = vcmp.eq.s32.totalorder %v1104_v7, 28  ;;  %vm510_vm10 = vcmp.eq.s32.totalorder %v1099_v6, 29  ;;  %vm511_vm11 = vcmp.eq.s32.totalorder %v1104_v7, 29 }
  0x2a   :  { %v454_v28 = vadd.f32 %v1381_v54, %v448_v19  ;;  %v455_v29 = vadd.f32 %v1384_v55, %v449_v47  ;;  %v1547_v56 = vsel %vm504_vm8, %v1497_v40, 0.0  ;;  %v1550_v57 = vsel %vm505_vm9, %v1502_v60, 0.0  ;;  %v1565_v54 = vld [vmem:[%s1855_s1 + $0x1f0] sm:$0xff]  ;;  %v1570_v55 = vld [vmem:[%s1855_s1 + $0x1f8] sm:$0xff]  ;;  %s1025_s1 = smov 127  }
  0x2b   :  { %1925 = vst [vmem:[#allocation36_spill] sm:$0xff] %v1565_v54  ;;  %1926 = vst [vmem:[#allocation37_spill] sm:$0xff] %v1570_v55  ;;  %v1573_v47 = vsel %vm510_vm10, %v1515_v63, 0.0  ;;  %v1576_v19 = vsel %vm511_vm11, %v1520_v31, 0.0  ;;  %vm516_vm12 = vcmp.eq.s32.totalorder %v1099_v6, 30  ;;  %vm517_vm13 = vcmp.eq.s32.totalorder %v1104_v7, 30 }
  0x2c   :  { %v460_v60 = vadd.f32 %v1397_v41, %v454_v28  ;;  %v461_v40 = vadd.f32 %v1400_v30, %v455_v29  ;;  %v1583_v15 = vsel %vm516_vm12, %v1533_v45, 0.0  ;;  %v1586_v14 = vsel %vm517_vm13, %v1538_v24, 0.0 }
  0x2d   :  { %vm522_vm14 = vcmp.eq.s32.totalorder %v1099_v6, 31  ;;  %vm523_vm15 = vcmp.eq.s32.totalorder %v1104_v7, 31  ;;  %vm26_vm0 = vcmp.eq.s32.totalorder %v1555_v34, 0  ;;  %vm27_vm1 = vcmp.eq.s32.totalorder %v1560_v51, 0 }
  0x2e   :  { %v466_v31 = vadd.f32 %v1415_v61, %v460_v60  ;;  %v467_v41 = vadd.f32 %v1418_v13, %v461_v40  ;;  %v1595_v30 = vsel %vm522_vm14, %v1565_v54, 0.0  ;;  %v1598_v28 = vsel %vm523_vm15, %v1570_v55, 0.0 }
  0x2f   :  { %v30_v29 = vsel %vm26_vm0, %v1069_v0, 0.0  ;;  %v31_v6 = vsel %vm27_vm1, %v1074_v1, 0.0  ;;  %vm34_vm2 = vcmp.eq.s32.totalorder %v1555_v34, 1  ;;  %vm35_vm3 = vcmp.eq.s32.totalorder %v1560_v51, 1 }
  0x30   :  { %v472_v7 = vadd.f32 %v1435_v22, %v466_v31  ;;  %v473_v60 = vadd.f32 %v1438_v23, %v467_v41  ;;  %v39_v40 = vsel %vm34_vm2, %v1079_v2, 0.0  ;;  %v40_v61 = vsel %vm35_vm3, %v1084_v3, 0.0 }
  0x31   :  { %v41_v13 = vadd.f32 %v39_v40, %v30_v29  ;;  %v42_v54 = vadd.f32 %v40_v61, %v31_v6  ;;  %vm43_vm4 = vcmp.eq.s32.totalorder %v1555_v34, 2  ;;  %vm44_vm5 = vcmp.eq.s32.totalorder %v1560_v51, 2 }
  0x32   :  { %v478_v0 = vadd.f32 %v1451_v35, %v472_v7  ;;  %v479_v1 = vadd.f32 %v1454_v46, %v473_v60  ;;  %v48_v55 = vsel %vm43_vm4, %v1089_v4, 0.0  ;;  %v49_v22 = vsel %vm44_vm5, %v1094_v5, 0.0 }
  0x33   :  { %v50_v31 = vadd.f32 %v48_v55, %v41_v13  ;;  %v51_v23 = vadd.f32 %v49_v22, %v42_v54  ;;  %vm52_vm6 = vcmp.eq.s32.totalorder %v1555_v34, 3  ;;  %vm53_vm7 = vcmp.eq.s32.totalorder %v1560_v51, 3 }
  0x34   :  { %v484_v2 = vadd.f32 %v1469_v50, %v478_v0  ;;  %v485_v3 = vadd.f32 %v1472_v18, %v479_v1  ;;  %v57_v41 = vsel %vm52_vm6, %v1109_v8, 0.0  ;;  %v58_v35 = vsel %vm53_vm7, %v1114_v9, 0.0 }
  0x35   :  { %v59_v29 = vadd.f32 %v57_v41, %v50_v31  ;;  %v60_v46 = vadd.f32 %v58_v35, %v51_v23  ;;  %vm61_vm8 = vcmp.eq.s32.totalorder %v1555_v34, 4  ;;  %vm62_vm9 = vcmp.eq.s32.totalorder %v1560_v51, 4 }
  0x36   :  { %v490_v4 = vadd.f32 %v1489_v38, %v484_v2  ;;  %v491_v5 = vadd.f32 %v1492_v39, %v485_v3  ;;  %v66_v54 = vsel %vm61_vm8, %v1129_v16, 0.0  ;;  %v67_v50 = vsel %vm62_vm9, %v1134_v17, 0.0 }
  0x37   :  { %v68_v55 = vadd.f32 %v66_v54, %v59_v29  ;;  %v69_v18 = vadd.f32 %v67_v50, %v60_v46  ;;  %vm70_vm10 = vcmp.eq.s32.totalorder %v1555_v34, 5  ;;  %vm71_vm11 = vcmp.eq.s32.totalorder %v1560_v51, 5  ;;  %v1927_v29 = vld [vmem:[#allocation5_spill] sm:$0xff]  ;;  %v1930_v54 = vld [vmem:[#allocation8_spill] sm:$0xff] }
  0x38   :  { %v496_v8 = vadd.f32 %v1505_v25, %v490_v4  ;;  %v497_v9 = vadd.f32 %v1508_v62, %v491_v5  ;;  %v75_v6 = vsel %vm70_vm10, %v1143_v20, 0.0  ;;  %v76_v38 = vsel %vm71_vm11, %v1148_v21, 0.0  ;;  %v1928_v4 = vld [vmem:[#allocation6_spill] sm:$0xff] }
  0x39   :  { %v77_v7 = vadd.f32 %v75_v6, %v68_v55  ;;  %v78_v39 = vadd.f32 %v76_v38, %v69_v18  ;;  %vm79_vm12 = vcmp.eq.s32.totalorder %v1555_v34, 6  ;;  %vm80_vm13 = vcmp.eq.s32.totalorder %v1560_v51, 6  ;;  %v1932_v6 = vld [vmem:[#allocation10_spill] sm:$0xff] }
  0x3a   :  { %v502_v16 = vadd.f32 %v1525_v12, %v496_v8  ;;  %v503_v17 = vadd.f32 %v1528_v44, %v497_v9  ;;  %v84_v60 = vsel %vm79_vm12, %v1155_v26, 0.0  ;;  %v85_v25 = vsel %vm80_vm13, %v1160_v27, 0.0  ;;  %v1931_v8 = vld [vmem:[#allocation9_spill] sm:$0xff] }
  0x3b   :  { %v86_v40 = vadd.f32 %v84_v60, %v77_v7  ;;  %v87_v62 = vadd.f32 %v85_v25, %v78_v39  ;;  %vm88_vm14 = vcmp.eq.s32.totalorder %v1555_v34, 7  ;;  %vm89_vm15 = vcmp.eq.s32.totalorder %v1560_v51, 7  ;;  %v1934_v60 = vld [vmem:[#allocation12_spill] sm:$0xff] }
  0x3c   :  { %v508_v20 = vadd.f32 %v1547_v56, %v502_v16  ;;  %v509_v21 = vadd.f32 %v1550_v57, %v503_v17  ;;  %v93_v61 = vsel %vm88_vm14, %v1171_v32, 0.0  ;;  %v94_v12 = vsel %vm89_vm15, %v1176_v33, 0.0  ;;  %v1933_v16 = vld [vmem:[#allocation11_spill] sm:$0xff] }
  0x3d   :  { %v95_v13 = vadd.f32 %v93_v61, %v86_v40  ;;  %v96_v44 = vadd.f32 %v94_v12, %v87_v62  ;;  %vm97_vm0 = vcmp.eq.s32.totalorder %v1555_v34, 8  ;;  %vm98_vm1 = vcmp.eq.s32.totalorder %v1560_v51, 8  ;;  %v1936_v61 = vld [vmem:[#allocation14_spill] sm:$0xff] }
  0x3e   :  { %v514_v26 = vadd.f32 %v1573_v47, %v508_v20  ;;  %v515_v27 = vadd.f32 %v1576_v19, %v509_v21  ;;  %v102_v0 = vsel %vm97_vm0, %v1185_v36, 0.0  ;;  %v103_v56 = vsel %vm98_vm1, %v1190_v37, 0.0  ;;  %v1935_v20 = vld [vmem:[#allocation13_spill] sm:$0xff] }
  0x3f   :  { %v104_v1 = vadd.f32 %v102_v0, %v95_v13  ;;  %v105_v57 = vadd.f32 %v103_v56, %v96_v44  ;;  %vm106_vm2 = vcmp.eq.s32.totalorder %v1555_v34, 9  ;;  %vm107_vm3 = vcmp.eq.s32.totalorder %v1560_v51, 9  ;;  %v1938_v0 = vld [vmem:[#allocation16_spill] sm:$0xff] }
  0x40   :  { %v520_v32 = vadd.f32 %v1583_v15, %v514_v26  ;;  %v521_v33 = vadd.f32 %v1586_v14, %v515_v27  ;;  %v111_v22 = vsel %vm106_vm2, %v1197_v42, 0.0  ;;  %v112_v47 = vsel %vm107_vm3, %v1202_v43, 0.0  ;;  %v1937_v26 = vld [vmem:[#allocation15_spill] sm:$0xff] }
  0x41   :  { %v113_v31 = vadd.f32 %v111_v22, %v104_v1  ;;  %v114_v19 = vadd.f32 %v112_v47, %v105_v57  ;;  %vm115_vm4 = vcmp.eq.s32.totalorder %v1555_v34, 10  ;;  %vm116_vm5 = vcmp.eq.s32.totalorder %v1560_v51, 10  ;;  %v1940_v22 = vld [vmem:[#allocation18_spill] sm:$0xff] }
  0x42   :  { %v526_v36 = vadd.f32 %v1595_v30, %v520_v32  ;;  %v527_v37 = vadd.f32 %v1598_v28, %v521_v33  ;;  %v120_v23 = vsel %vm115_vm4, %v1213_v48, 0.0  ;;  %v121_v15 = vsel %vm116_vm5, %v1218_v49, 0.0  ;;  %v1939_v32 = vld [vmem:[#allocation17_spill] sm:$0xff] }
  0x43   :  { %v122_v2 = vadd.f32 %v120_v23, %v113_v31  ;;  %v123_v14 = vadd.f32 %v121_v15, %v114_v19  ;;  %vm124_vm6 = vcmp.eq.s32.totalorder %v1555_v34, 11  ;;  %vm125_vm7 = vcmp.eq.s32.totalorder %v1560_v51, 11  ;;  %v1942_v23 = vld [vmem:[#allocation20_spill] sm:$0xff] }
  0x44   :  { %v1664_v42 = vpack.i.bf16 %v527_v37, %v526_v36  ;;  %v129_v43 = vsel %vm124_vm6, %v1227_v52, 0.0  ;;  %v130_v3 = vsel %vm125_vm7, %v1232_v53, 0.0  ;;  %vm133_vm8 = vcmp.eq.s32.totalorder %v1555_v34, 12  ;;  %v1941_v36 = vld [vmem:[#allocation19_spill] sm:$0xff] }
  0x45   :  { %v131_v41 = vadd.f32 %v129_v43, %v122_v2  ;;  %v132_v30 = vadd.f32 %v130_v3, %v123_v14  ;;  %vm134_vm9 = vcmp.eq.s32.totalorder %v1560_v51, 12  ;;  %v138_v48 = vsel %vm133_vm8, %v1239_v58, 0.0  ;;  %v1943_v43 = vld [vmem:[#allocation21_spill] sm:$0xff] }
  0x46   :  { %958 = vrot.lane.b32.xlu0 %v1664_v42, %s1024_s0  ;;  %v139_v49 = vsel %vm134_vm9, %v1244_v59, 0.0  ;;  %vm142_vm10 = vcmp.eq.s32.totalorder %v1555_v34, 13  ;;  %vm143_vm11 = vcmp.eq.s32.totalorder %v1560_v51, 13  ;;  %vm151_vm12 = vcmp.eq.s32.totalorder %v1555_v34, 14 }
  0x47   :  { %v140_v52 = vadd.f32 %v138_v48, %v131_v41  ;;  %v141_v53 = vadd.f32 %v139_v49, %v132_v30  ;;  %v147_v28 = vsel %vm142_vm10, %v1255_v10, 0.0  ;;  %v148_v35 = vsel %vm143_vm11, %v1260_v11, 0.0  ;;  %v1929_v10 = vld [vmem:[#allocation7_spill] sm:$0xff]  ;;  %v1944_v41 = vld [vmem:[#allocation22_spill] sm:$0xff] }
  0x48   :  { %vm152_vm13 = vcmp.eq.s32.totalorder %v1560_v51, 14  ;;  %vm160_vm14 = vcmp.eq.s32.totalorder %v1555_v34, 15  ;;  %vm161_vm15 = vcmp.eq.s32.totalorder %v1560_v51, 15  ;;  %v156_v46 = vsel %vm151_vm12, %v1927_v29, 0.0  ;;  %v1947_v29 = vld [vmem:[#allocation25_spill] sm:$0xff] }
  0x49   :  { %v149_v58 = vadd.f32 %v147_v28, %v140_v52  ;;  %v150_v59 = vadd.f32 %v148_v35, %v141_v53  ;;  %v157_v5 = vsel %vm152_vm13, %v1928_v4, 0.0  ;;  %v165_v11 = vsel %vm160_vm14, %v1929_v10, 0.0  ;;  %v1945_v52 = vld [vmem:[#allocation23_spill] sm:$0xff]  ;;  %v1946_v28 = vld [vmem:[#allocation24_spill] sm:$0xff]  ;;  %v1948_v4 = vld [vmem:[#allocation26_spill] sm:$0xff] }
  0x4a   :  { %963 = vrot.lane.b32.xlu0 %v1664_v42, %s1025_s1  ;;  %v166_v50 = vsel %vm161_vm15, %v1930_v54, 0.0  ;;  %vm169_vm0 = vcmp.eq.s32.totalorder %v1555_v34, 16  ;;  %vm170_vm1 = vcmp.eq.s32.totalorder %v1560_v51, 16  ;;  %vm178_vm2 = vcmp.eq.s32.totalorder %v1555_v34, 17  ;;  %v1949_v54 = vld [vmem:[#allocation27_spill] sm:$0xff] }
  0x4b   :  { %v158_v55 = vadd.f32 %v156_v46, %v149_v58  ;;  %v159_v18 = vadd.f32 %v157_v5, %v150_v59  ;;  %v174_v9 = vsel %vm169_vm0, %v1931_v8, 0.0  ;;  %v175_v38 = vsel %vm170_vm1, %v1932_v6, 0.0  ;;  %v1951_v6 = vld [vmem:[#allocation29_spill] sm:$0xff] }
  0x4c   :  { %vm179_vm3 = vcmp.eq.s32.totalorder %v1560_v51, 17  ;;  %vm187_vm4 = vcmp.eq.s32.totalorder %v1555_v34, 18  ;;  %vm188_vm5 = vcmp.eq.s32.totalorder %v1560_v51, 18  ;;  %v183_v17 = vsel %vm178_vm2, %v1933_v16, 0.0 }
  0x4d   :  { %v167_v7 = vadd.f32 %v165_v11, %v158_v55  ;;  %v168_v39 = vadd.f32 %v166_v50, %v159_v18  ;;  %v184_v25 = vsel %vm179_vm3, %v1934_v60, 0.0  ;;  %vm196_vm6 = vcmp.eq.s32.totalorder %v1555_v34, 19  ;;  %v1950_v55 = vld [vmem:[#allocation28_spill] sm:$0xff]  ;;  %v1953_v60 = vld [vmem:[#allocation31_spill] sm:$0xff] }
  0x4e   :  { %vm197_vm7 = vcmp.eq.s32.totalorder %v1560_v51, 19  ;;  %v192_v21 = vsel %vm187_vm4, %v1935_v20, 0.0  ;;  %v193_v12 = vsel %vm188_vm5, %v1936_v61, 0.0  ;;  %vm205_vm8 = vcmp.eq.s32.totalorder %v1555_v34, 20  ;;  %978 = vrot.lane.b32.xlu0 %v1664_v42, %s1026_s13  ;;  %v1955_v61 = vld [vmem:[#allocation33_spill] sm:$0xff] }
  0x4f   :  { %v176_v40 = vadd.f32 %v174_v9, %v167_v7  ;;  %v177_v62 = vadd.f32 %v175_v38, %v168_v39  ;;  %vm206_vm9 = vcmp.eq.s32.totalorder %v1560_v51, 20  ;;  %v201_v27 = vsel %vm196_vm6, %v1937_v26, 0.0  ;;  %v1952_v7 = vld [vmem:[#allocation30_spill] sm:$0xff] }
  0x50   :  { %v202_v56 = vsel %vm197_vm7, %v1938_v0, 0.0  ;;  %vm214_vm10 = vcmp.eq.s32.totalorder %v1555_v34, 21  ;;  %vm215_vm11 = vcmp.eq.s32.totalorder %v1560_v51, 21  ;;  %v210_v33 = vsel %vm205_vm8, %v1939_v32, 0.0 }
  0x51   :  { %v185_v13 = vadd.f32 %v183_v17, %v176_v40  ;;  %v186_v44 = vadd.f32 %v184_v25, %v177_v62  ;;  %v211_v47 = vsel %vm206_vm9, %v1940_v22, 0.0  ;;  %vm223_vm12 = vcmp.eq.s32.totalorder %v1555_v34, 22  ;;  %v1954_v40 = vld [vmem:[#allocation32_spill] sm:$0xff] }
  0x52   :  { %vm224_vm13 = vcmp.eq.s32.totalorder %v1560_v51, 22  ;;  %v219_v37 = vsel %vm214_vm10, %v1941_v36, 0.0  ;;  %v220_v15 = vsel %vm215_vm11, %v1942_v23, 0.0  ;;  %vm232_vm14 = vcmp.eq.s32.totalorder %v1555_v34, 23  ;;  %v1959_v36 = vld [vmem:[#allocation37_spill] sm:$0xff] }
  0x53   :  { %v194_v1 = vadd.f32 %v192_v21, %v185_v13  ;;  %v195_v57 = vadd.f32 %v193_v12, %v186_v44  ;;  %vm233_vm15 = vcmp.eq.s32.totalorder %v1560_v51, 23  ;;  %v228_v3 = vsel %vm223_vm12, %v1943_v43, 0.0  ;;  %v1956_v13 = vld [vmem:[#allocation34_spill] sm:$0xff] }
  0x54   :  { %v229_v30 = vsel %vm224_vm13, %v1944_v41, 0.0  ;;  %vm241_vm0 = vcmp.eq.s32.totalorder %v1555_v34, 24  ;;  %vm242_vm1 = vcmp.eq.s32.totalorder %v1560_v51, 24  ;;  %v237_v53 = vsel %vm232_vm14, %v1945_v52, 0.0 }
  0x55   :  { %v203_v31 = vadd.f32 %v201_v27, %v194_v1  ;;  %v204_v19 = vadd.f32 %v202_v56, %v195_v57  ;;  %v238_v35 = vsel %vm233_vm15, %v1946_v28, 0.0  ;;  %vm250_vm2 = vcmp.eq.s32.totalorder %v1555_v34, 25  ;;  %v1957_v56 = vld [vmem:[#allocation35_spill] sm:$0xff] }
  0x56   :  { %vm251_vm3 = vcmp.eq.s32.totalorder %v1560_v51, 25  ;;  %v246_v46 = vsel %vm241_vm0, %v1947_v29, 0.0  ;;  %v247_v5 = vsel %vm242_vm1, %v1948_v4, 0.0  ;;  %vm259_vm4 = vcmp.eq.s32.totalorder %v1555_v34, 26  ;;  %v581_v29 = vld [vmem:[%s1857_s3 + $0x10] sm:$0xff] }
  0x57   :  { %v212_v2 = vadd.f32 %v210_v33, %v203_v31  ;;  %v213_v14 = vadd.f32 %v211_v47, %v204_v19  ;;  %vm260_vm5 = vcmp.eq.s32.totalorder %v1560_v51, 26  ;;  %v255_v50 = vsel %vm250_vm2, %v1949_v54, 0.0  ;;  %v1958_v31 = vld [vmem:[#allocation36_spill] sm:$0xff] }
  0x58   :  { %v256_v18 = vsel %vm251_vm3, %v1950_v55, 0.0  ;;  %vm268_vm6 = vcmp.eq.s32.totalorder %v1555_v34, 27  ;;  %vm269_vm7 = vcmp.eq.s32.totalorder %v1560_v51, 27  ;;  %v264_v38 = vsel %vm259_vm4, %v1951_v6, 0.0 }
  0x59   :  { %v221_v48 = vadd.f32 %v219_v37, %v212_v2  ;;  %v222_v49 = vadd.f32 %v220_v15, %v213_v14  ;;  %v265_v39 = vsel %vm260_vm5, %v1952_v7, 0.0  ;;  %vm277_vm8 = vcmp.eq.s32.totalorder %v1555_v34, 28 }
  0x5a   :  { %vm278_vm9 = vcmp.eq.s32.totalorder %v1560_v51, 28  ;;  %v273_v25 = vsel %vm268_vm6, %v1953_v60, 0.0  ;;  %v274_v62 = vsel %vm269_vm7, %v1954_v40, 0.0  ;;  %vm286_vm10 = vcmp.eq.s32.totalorder %v1555_v34, 29 }
  0x5b   :  { %v230_v58 = vadd.f32 %v228_v3, %v221_v48  ;;  %v231_v59 = vadd.f32 %v229_v30, %v222_v49  ;;  %vm287_vm11 = vcmp.eq.s32.totalorder %v1560_v51, 29  ;;  %v282_v12 = vsel %vm277_vm8, %v1955_v61, 0.0 }
  0x5c   :  { %v283_v44 = vsel %vm278_vm9, %v1956_v13, 0.0  ;;  %vm295_vm12 = vcmp.eq.s32.totalorder %v1555_v34, 30  ;;  %vm296_vm13 = vcmp.eq.s32.totalorder %v1560_v51, 30  ;;  %v291_v0 = vsel %vm286_vm10, %v1515_v63, 0.0 }
  0x5d   :  { %v239_v10 = vadd.f32 %v237_v53, %v230_v58  ;;  %v240_v11 = vadd.f32 %v238_v35, %v231_v59  ;;  %v292_v42 = vsel %vm287_vm11, %v1957_v56, 0.0  ;;  %vm304_vm14 = vcmp.eq.s32.totalorder %v1555_v34, 31  ;;  %v579_v35 = vld [vmem:[%s1857_s3] sm:$0xff]  ;;  %v580_v59 = vld [vmem:[%s1857_s3 + $0x8] sm:$0xff] }
  0x5e   :  { %vm305_vm15 = vcmp.eq.s32.totalorder %v1560_v51, 31  ;;  %v300_v32 = vsel %vm295_vm12, %v1533_v45, 0.0  ;;  %v301_v33 = vsel %vm296_vm13, %v1538_v24, 0.0  ;;  %v309_v19 = vsel %vm304_vm14, %v1958_v31, 0.0 }
  0x5f   :  { %v248_v8 = vadd.f32 %v246_v46, %v239_v10  ;;  %v249_v9 = vadd.f32 %v247_v5, %v240_v11  ;;  %v310_v37 = vsel %vm305_vm15, %v1959_v36, 0.0  ;;  %vm321_vm0 = vcmask 7168   ;;  %v582_v46 = vld [vmem:[%s1857_s3 + $0x18] sm:$0xff] }
  0x60   :  { %vm330_vm1 = vcmask 973824   ;;  %v1027_v53 = vmov 0.0   ;;  %v1028_v58 = vmov 0   ;;  %vm568_vm2 = vcmask 982016  }
  0x61   :  { %v257_v16 = vadd.f32 %v255_v50, %v248_v8  ;;  %v258_v17 = vadd.f32 %v256_v18, %v249_v9  ;;  %680 = vmatprep.mubr.f32.mxu0 %v1027_v53  ;;  %692 = vmatprep.mubr.f32.mxu1 %v1027_v53  ;;  %vm603_vm3 = vcmask 392192   ;;  %vm725_vm4 = vcmask 1048512  }
  0x62   :  { %992 = vset.pattern.permute.xlu1 %v1028_v58  ;;  %993 = vset.pattern.permute.xlu0 %v1028_v58  ;;  %vm727_vm5 = vcmask 916480   ;;  %vm779_vm6 = vcmask 31744   ;;  %vm826_vm7 = vcmask 1040384   ;;  %vm836_vm8 = vcmask 25600  }
  0x63   :  { %v266_v20 = vadd.f32 %v264_v38, %v257_v16  ;;  %v267_v21 = vadd.f32 %v265_v39, %v258_v17 }
  0x65   :  { %v275_v26 = vadd.f32 %v273_v25, %v266_v20  ;;  %v276_v27 = vadd.f32 %v274_v62, %v267_v21 }
  0x67   :  { %v284_v1 = vadd.f32 %v282_v12, %v275_v26  ;;  %v285_v57 = vadd.f32 %v283_v44, %v276_v27 }
  0x69   :  { %v293_v22 = vadd.f32 %v291_v0, %v284_v1  ;;  %v294_v47 = vadd.f32 %v292_v42, %v285_v57  ;;  %v575_v1 = vld [vmem:[%s1856_s2] sm:$0xff]  ;;  %v577_v57 = vld [vmem:[%s1856_s2 + $0x10] sm:$0xff] }
  0x6b   :  { %v302_v23 = vadd.f32 %v300_v32, %v293_v22  ;;  %v303_v63 = vadd.f32 %v301_v33, %v294_v47  ;;  %v576_v32 = vld [vmem:[%s1856_s2 + $0x8] sm:$0xff]  ;;  %v578_v33 = vld [vmem:[%s1856_s2 + $0x18] sm:$0xff] }
  0x6d   :  { %v311_v15 = vadd.f32 %v309_v19, %v302_v23  ;;  %v312_v2 = vadd.f32 %v310_v37, %v303_v63 }
  0x6f   :  { %v967_v14 = vpack.i.bf16 %v312_v2, %v311_v15 }
  0x71   :  { %968 = vrot.lane.b32.xlu1 %v967_v14, %s1024_s0  ;;  %s1030_s0 = smov [#allocation2]  }
  0xb8   :  { %v959_v34 = vpop.permute.xlu0 %958 }
  0xb9   :  { %v961_v51 = vunpack.i.h.bf16 %v959_v34  ;;  %v960_v43 = vunpack.i.l.bf16 %v959_v34 }
  0xbb   :  { %v537_v45 = vsel %vm321_vm0, 0.0, %v961_v51  ;;  %v536_v24 = vsel %vm321_vm0, 0.0, %v960_v43 }
  0xbc   :  { %v972_v3 = vpack.i.bf16 %v537_v45, %v536_v24  ;;  %v964_v41 = vpop.permute.xlu0 %963 }
  0xbd   :  { %v966_v30 = vunpack.i.h.bf16 %v964_v41  ;;  %v965_v48 = vunpack.i.l.bf16 %v964_v41 }
  0xbe   :  { %973 = vrot.lane.b32.xlu1 %v972_v3, %s1026_s13 }
  0xbf   :  { %v545_v49 = vsel %vm330_vm1, %v966_v30, 0.0  ;;  %v544_v52 = vsel %vm330_vm1, %v965_v48, 0.0 }
  0xc0   :  { %v987_v28 = vpack.i.bf16 %v545_v49, %v544_v52  ;;  %v979_v5 = vpop.permute.xlu0 %978 }
  0xc1   :  { %v981_v54 = vunpack.i.h.bf16 %v979_v5  ;;  %v980_v50 = vunpack.i.l.bf16 %v979_v5 }
  0xc2   :  { %983 = vrot.lane.b32.xlu1 %v967_v14, %s1025_s1  ;;  %988 = vrot.lane.b32.xlu0 %v987_v28, %s1026_s13  ;;  %s855_s1 = sshll.u32 %s1030_s0, 4  ;;  %s856_s1 = int_to_ptr.vmem [resolvable:$true] %s855_s1 }
  0xc3   :  { %v936_v38 = vpack.c.bf16 %v981_v54, %v980_v50  ;;  %v571_v7 = vsel %vm568_vm2, %v311_v15, %v980_v50  ;;  %v572_v60 = vsel %vm568_vm2, %v312_v2, %v981_v54  ;;  %p1005_p1 = scmp.lt.s32.totalorder %s856_s1, %s856_s1 }
  0xc4   :  { %v938_v13 = vpack.c.bf16 %v572_v60, %v571_v7 }
  0xc6   :  { %585 = vperm.xlu1 %992, %v579_v35   ;;  %590 = vperm.xlu0 %993, %v580_v59  }
  0xca   :  { %595 = vperm.xlu1 %992, %v581_v29  }
  0xce   :  { %600 = vperm.xlu1 %992, %v582_v46  }
  0xe3   :  { %v969_v4 = vpop.permute.xlu1 %968 }
  0xe4   :  { %v971_v10 = vunpack.i.h.bf16 %v969_v4  ;;  %v970_v11 = vunpack.i.l.bf16 %v969_v4 }
  0xe6   :  { %v323_v9 = vsel %vm321_vm0, 0.0, %v971_v10  ;;  %v322_v6 = vsel %vm321_vm0, 0.0, %v970_v11 }
 0x130   :  { %v974_v55 = vpop.permute.xlu1 %973 }
 0x131   :  { %v976_v18 = vunpack.i.h.bf16 %v974_v55  ;;  %v975_v8 = vunpack.i.l.bf16 %v974_v55 }
 0x133   :  { %v932_v39 = vpack.c.bf16 %v976_v18, %v975_v8  ;;  %v569_v16 = vsel %vm568_vm2, %v322_v6, %v975_v8  ;;  %v570_v17 = vsel %vm568_vm2, %v323_v9, %v976_v18 }
 0x134   :  { %v934_v25 = vpack.c.bf16 %v570_v17, %v569_v16  ;;  %v984_v40 = vpop.permute.xlu1 %983  ;;  %v989_v62 = vpop.permute.xlu0 %988 }
 0x135   :  { %933 = vmatprep.subr.bf16.mxu0 %v932_v39  ;;  %944 = vmatprep.subr.bf16.mxu1 %v932_v39  ;;  %v986_v20 = vunpack.i.h.bf16 %v984_v40  ;;  %v985_v21 = vunpack.i.l.bf16 %v984_v40  ;;  %v991_v61 = vunpack.i.h.bf16 %v989_v62  ;;  %v990_v12 = vunpack.i.l.bf16 %v989_v62 }
 0x136   :  { %935 = vmatpush1.bf16.msra.mxu0 %v934_v25  ;;  %947 = vmatpush1.bf16.msra.mxu1 %v934_v25 }
 0x137   :  { %v332_v44 = vsel %vm330_vm1, %v986_v20, 0.0  ;;  %v331_v26 = vsel %vm330_vm1, %v985_v21, 0.0  ;;  %v940_v27 = vpack.c.bf16 %v991_v61, %v990_v12  ;;  %937 = vmatprep.subr.bf16.mxu0 %v936_v38  ;;  %945 = vmatprep.subr.bf16.mxu1 %v936_v38 }
 0x138   :  { %v573_v0 = vsel %vm568_vm2, %v331_v26, %v990_v12  ;;  %v574_v56 = vsel %vm568_vm2, %v332_v44, %v991_v61  ;;  %v1029_v61 = vmov 1  }
 0x139   :  { %v942_v42 = vpack.c.bf16 %v574_v56, %v573_v0  ;;  %v751_v56 = vld [vmem:[%s1858_s4] sm:$0xff] }
 0x13a   :  { %939 = vmatpush1.bf16.msra.mxu0 %v938_v13  ;;  %948 = vmatpush1.bf16.msra.mxu1 %v938_v13 }
 0x13b   :  { %941 = vmatprep.subr.bf16.mxu0 %v940_v27  ;;  %946 = vmatprep.subr.bf16.mxu1 %v940_v27 }
 0x13e   :  { %943 = vmatpush1.bf16.msra.mxu0 %v942_v42  ;;  %949 = vmatpush1.bf16.msra.mxu1 %v942_v42 }
 0x141   :  { %927 = vmatmul.mubr.msk.f32.vlgmr.msra.gmra.mrb[0].mxu0 %vm603_vm3, %v575_v1  ;;  %929 = vmatmul.mubr.msk.f32.vlgmr.msra.gmra.mrb[0].mxu1 %vm603_vm3, %v577_v57  ;;  %v753_v57 = vld [vmem:[%s1858_s4 + $0x10] sm:$0xff] }
 0x142   :  { %686 = vmatprep.mubr.f32.mxu0 %v1027_v53  ;;  %698 = vmatprep.mubr.f32.mxu1 %v1027_v53 }
 0x145   :  { %928 = vmatmul.mubr.msk.f32.gmra.mrb[2].mxu0 %vm603_vm3, %v576_v32  ;;  %930 = vmatmul.mubr.msk.f32.gmra.mrb[2].mxu1 %vm603_vm3, %v578_v33  ;;  %v586_v22 = vpop.permute.xlu1 %585  ;;  %v591_v14 = vpop.permute.xlu0 %590  ;;  %v752_v32 = vld [vmem:[%s1858_s4 + $0x8] sm:$0xff] }
 0x149   :  { %v596_v47 = vpop.permute.xlu1 %595 }
 0x14d   :  { %v601_v34 = vpop.permute.xlu1 %600 }
 0x214   :  { %v682_v31 = vpop.f32.mrb[0].mxu0  ;;  %v694_v19 = vpop.f32.mrb[0].mxu1 }
 0x215   :  { %v683_v36 = vadd.f32 %v682_v31, %v586_v22  ;;  %v695_v37 = vadd.f32 %v694_v19, %v596_v47  ;;  %v684_v23 = vpop.f32.mrb[1].mxu0  ;;  %v696_v63 = vpop.f32.mrb[1].mxu1 }
 0x216   :  { %v685_v15 = vadd.f32 %v684_v23, %v586_v22  ;;  %v697_v2 = vadd.f32 %v696_v63, %v596_v47 }
 0x217   :  { %v705_v51 = vmax.f32 %v683_v36, 0.0  ;;  %v709_v43 = vmax.f32 %v695_v37, 0.0  ;;  %v754_v36 = vld [vmem:[%s1858_s4 + $0x18] sm:$0xff] }
 0x218   :  { %v706_v45 = vmax.f32 %v685_v15, 0.0  ;;  %v710_v24 = vmax.f32 %v697_v2, 0.0  ;;  %v688_v3 = vpop.f32.mrb[2].mxu0  ;;  %v700_v41 = vpop.f32.mrb[2].mxu1 }
 0x219   :  { %v689_v30 = vadd.f32 %v688_v3, %v591_v14  ;;  %v701_v48 = vadd.f32 %v700_v41, %v601_v34  ;;  %v702_v49 = vpop.f32.mrb[3].mxu1  ;;  %v719_v52 = vsel %vm568_vm2, %v709_v43, -inf  ;;  %v713_v53 = vsel %vm568_vm2, %v705_v51, -inf  ;;  %v690_v28 = vpop.f32.mrb[3].mxu0 }
 0x21a   :  { %v703_v35 = vadd.f32 %v702_v49, %v601_v34  ;;  %720 = vmax.xlane.f32.xlu1 %v719_v52  ;;  %714 = vmax.xlane.f32.xlu0 %v713_v53  ;;  %v691_v58 = vadd.f32 %v690_v28, %v591_v14  ;;  %v726_v59 = vsel %vm725_vm4, %v705_v51, -inf  ;;  %v728_v29 = vsel %vm727_vm5, %v706_v45, -inf }
 0x21b   :  { %v707_v46 = vmax.f32 %v689_v30, 0.0  ;;  %v711_v4 = vmax.f32 %v701_v48, 0.0  ;;  %v729_v5 = vmax.f32 %v726_v59, %v728_v29  ;;  %v737_v10 = vsel %vm725_vm4, %v709_v43, -inf }
 0x21c   :  { %v712_v11 = vmax.f32 %v703_v35, 0.0  ;;  %v708_v54 = vmax.f32 %v691_v58, 0.0  ;;  %v738_v50 = vsel %vm727_vm5, %v710_v24, -inf }
 0x21d   :  { %v716_v55 = vsel %vm568_vm2, %v707_v46, -inf  ;;  %v739_v18 = vmax.f32 %v737_v10, %v738_v50  ;;  %v732_v8 = vsel %vm725_vm4, %v707_v46, -inf  ;;  %v742_v6 = vsel %vm725_vm4, %v711_v4, -inf }
 0x21e   :  { %717 = vmax.xlane.f32.xlu1 %v716_v55  ;;  %730 = vmax.xlane.f32.xlu0 %v729_v5  ;;  %v733_v9 = vsel %vm727_vm5, %v708_v54, -inf  ;;  %v743_v38 = vsel %vm727_vm5, %v712_v11, -inf  ;;  %v722_v16 = vsel %vm568_vm2, %v711_v4, -inf }
 0x21f   :  { %v734_v7 = vmax.f32 %v732_v8, %v733_v9  ;;  %v744_v39 = vmax.f32 %v742_v6, %v743_v38  ;;  %v931_v6 = vld [vmem:[%s1859_s5] ss:$0 sm:$0xff]  ;;  %s1000_s5 = scalar_lea.vmem %s856_s1, 32 }
 0x220   :  { %p1001_p0 = scmp.ne.s32.totalorder %s856_s1, %s1000_s5  ;;  %p1006_p2 = scmp.lt.s32.totalorder %s1000_s5, %s1000_s5 }
 0x222   :  { %723 = vmax.xlane.f32.xlu1 %v722_v16  ;;  %740 = vmax.xlane.f32.xlu0 %v739_v18  ;;  %p1007_p3 = por %p1006_p2, %p1005_p1 }
 0x224   :  { %p1008_p4 = pnand %p1007_p3, %p1001_p0 }
 0x226   :  { %735 = vmax.xlane.f32.xlu0 %v734_v7 }
 0x22a   :  { %745 = vmax.xlane.f32.xlu0 %v744_v39 }
 0x2a7   :  { %v715_v17 = vpop.xlane.xlu0 %714  ;;  %v721_v60 = vpop.xlane.xlu1 %720 }
 0x2ab   :  { %v731_v25 = vpop.xlane.xlu0 %730  ;;  %v718_v21 = vpop.xlane.xlu1 %717 }
 0x2ac   :  { %v747_v40 = vsel %vm321_vm0, %v715_v17, %v731_v25 }
 0x2ad   :  { %757 = vperm.xlu1 %992, %v747_v40  }
 0x2af   :  { %v741_v62 = vpop.xlane.xlu0 %740  ;;  %v724_v44 = vpop.xlane.xlu1 %723 }
 0x2b0   :  { %v749_v20 = vsel %vm321_vm0, %v721_v60, %v741_v62 }
 0x2b1   :  { %994 = vset.pattern.permute.xlu1 %v1029_v61  ;;  %767 = vperm.xlu0 %993, %v749_v20  }
 0x2b2   :  { %794 = vperm.xlu1 %994, %v747_v40  }
 0x2b3   :  { %v736_v12 = vpop.xlane.xlu0 %735 }
 0x2b4   :  { %v748_v13 = vsel %vm321_vm0, %v718_v21, %v736_v12 }
 0x2b5   :  { %762 = vperm.xlu0 %993, %v748_v13  }
 0x2b6   :  { %802 = vperm.xlu1 %994, %v749_v20  }
 0x2b7   :  { %v746_v26 = vpop.xlane.xlu0 %745 }
 0x2b8   :  { %v750_v27 = vsel %vm321_vm0, %v724_v44, %v746_v26 }
 0x2b9   :  { %772 = vperm.xlu0 %993, %v750_v27  }
 0x2ba   :  { %798 = vperm.xlu1 %994, %v748_v13  }
 0x2bd   :  { %995 = vset.pattern.permute.xlu0 %v1029_v61 }
 0x2be   :  { %806 = vperm.xlu1 %994, %v750_v27  }
 0x32c   :  { %v758_v0 = vpop.permute.xlu1 %757 }
 0x32d   :  { %v775_v33 = vmul.f32 %v758_v0, %v751_v56 }
 0x32f   :  { %v780_v37 = vsel %vm779_vm6, %v775_v33, 0.0 }
 0x330   :  { %v768_v42 = vpop.permute.xlu0 %767 }
 0x331   :  { %v795_v1 = vpop.permute.xlu1 %794  ;;  %v777_v47 = vmul.f32 %v768_v42, %v753_v57 }
 0x332   :  { %v809_v63 = vmul.f32 %v795_v1, %v751_v56 }
 0x333   :  { %v783_v14 = vsel %vm779_vm6, %v777_v47, 0.0 }
 0x334   :  { %v763_v22 = vpop.permute.xlu0 %762  ;;  %v813_v41 = vsel %vm779_vm6, %v809_v63, 0.0 }
 0x335   :  { %v776_v31 = vmul.f32 %v763_v22, %v752_v32  ;;  %v803_v19 = vpop.permute.xlu1 %802 }
 0x336   :  { %v811_v43 = vmul.f32 %v803_v19, %v753_v57 }
 0x337   :  { %v781_v23 = vsel %vm779_vm6, %v776_v31, 0.0 }
 0x338   :  { %v782_v15 = vadd.f32 %v781_v23, %v780_v37  ;;  %v773_v2 = vpop.permute.xlu0 %772  ;;  %v816_v53 = vsel %vm779_vm6, %v811_v43, 0.0 }
 0x339   :  { %v778_v34 = vmul.f32 %v773_v2, %v754_v36  ;;  %v799_v51 = vpop.permute.xlu1 %798 }
 0x33a   :  { %v784_v45 = vadd.f32 %v783_v14, %v782_v15  ;;  %v810_v24 = vmul.f32 %v799_v51, %v752_v32 }
 0x33b   :  { %v785_v3 = vsel %vm779_vm6, %v778_v34, 0.0 }
 0x33c   :  { %v786_v30 = vadd.f32 %v785_v3, %v784_v45  ;;  %v814_v48 = vsel %vm779_vm6, %v810_v24, 0.0 }
 0x33d   :  { %v815_v49 = vadd.f32 %v814_v48, %v813_v41  ;;  %v807_v52 = vpop.permute.xlu1 %806 }
 0x33e   :  { %v787_v28 = vrot.slane %v786_v30, 4  ;;  %v812_v35 = vmul.f32 %v807_v52, %v754_v36 }
 0x33f   :  { %v817_v58 = vadd.f32 %v816_v53, %v815_v49 }
 0x340   :  { %v788_v59 = vadd.f32 %v787_v28, %v786_v30  ;;  %v818_v29 = vsel %vm779_vm6, %v812_v35, 0.0 }
 0x341   :  { %v819_v46 = vadd.f32 %v818_v29, %v817_v58 }
 0x342   :  { %v789_v4 = vrot.slane %v788_v59, 2 }
 0x343   :  { %v820_v5 = vrot.slane %v819_v46, 4 }
 0x344   :  { %v790_v10 = vadd.f32 %v789_v4, %v788_v59 }
 0x345   :  { %v821_v11 = vadd.f32 %v820_v5, %v819_v46 }
 0x346   :  { %v791_v50 = vrot.slane %v790_v10, 1 }
 0x347   :  { %v822_v54 = vrot.slane %v821_v11, 2 }
 0x348   :  { %v792_v8 = vadd.f32 %v791_v50, %v790_v10 }
 0x349   :  { %v823_v55 = vadd.f32 %v822_v54, %v821_v11 }
 0x34b   :  { %v824_v18 = vrot.slane %v823_v55, 1 }
 0x34d   :  { %v825_v9 = vadd.f32 %v824_v18, %v823_v55 }
 0x34f   :  { %v827_v38 = vsel %vm826_vm7, %v792_v8, %v825_v9 }
 0x350   :  { %v835_v7 = vadd.f32 %v931_v6, %v827_v38 }
 0x352   :  { %v837_v39 = vsel %vm836_vm8, %v835_v7, -inf }
 0x353   :  { %838 = vmax.xlane.f32.xlu0 %v837_v39 }
 0x3e0   :  { %v839_v16 = vpop.xlane.xlu0 %838 }
 0x3e1   :  { %v840_v17 = vsub.f32 %v835_v7, %v839_v16 }
 0x3e3   :  { %v841_v60 = vmul.f32 1.442695, %v840_v17 }
 0x3e5   :  { %996 = vpow2.f32 %v841_v60 }
 0x3ef   :  { %v997_v25 = vpop.eup %996 }
 0x3f0   :  { %v843_v40 = vsel %vm836_vm8, %v997_v25, 0.0 }
 0x3f1   :  { %844 = vadd.xlane.f32.xlu1 %v843_v40 }
 0x47e   :  { %v845_v62 = vpop.xlane.xlu1 %844 }
 0x47f   :  { %998 = vrcp.f32 %v845_v62 }
 0x489   :  { %v999_v20 = vpop.eup %998 }
 0x48a   :  { %v847_v21 = vmul.f32 %v999_v20, %v997_v25 }
 0x48c   :  { %848 = vst.msk [vmem:[#allocation2] sm:$0x3] %vm836_vm8, %v847_v21 }
 0x48d   :  { %1011 = shalt.err (!%p1008_p4)
}
 0x48e   :  { %s1012_s15 = scalar_lea.hbm %s1860_s6, 32 }
 0x48f   :  { %p1013_p5 = scmp.ne.s32.totalorder %s1860_s6, %s1012_s15  ;;  %p1016_p6 = scmp.lt.u32.totalorder %s1012_s15, %s1860_s6 }
 0x491   :  { %p1018_p7 = pnand %p1016_p6, %p1013_p5 }
 0x493   :  { %1021 = shalt.err (!%p1018_p7)
}
 0x494   :  { %858 = dma.vmem_to_hbm [thread:$0]  %s856_s1, 32, %s1860_s6, [#allocation3]  }
 0x495   :  { %1022 = dma.done.wait [#allocation3], 32  }
 0x496   :  { %1023 = vsyncadd [#allocation3], 4294967264 }
 0x497   :  { %862 = vsyncpa [#allocation3], 1 }

</bundles_post_ra>
